<compile_context>
chip_gen: v6e
topology: v6e:2x2x1
jax: 0.10.0
libtpu: 0.0.40
codegen_flags: <defaults>
</compile_context>

<pallas_src>
import functools

import jax
import jax.numpy as jnp
from jax.experimental import pallas as pl
from jax.experimental.pallas import tpu as pltpu

VIDEO_DIM = 400      # S3D kinetics-400 output
TEXT_DIM = 768       # BERT hidden size
HIDDEN = 128         # fc1 output
NUM_CLASSES = 4


def _round_up(x, m):
    return ((x + m - 1) // m) * m


def fusion_head_kernel(text_ref, vid_ref, w1t_ref, w1v_ref, b1_ref,
                       w2_ref, b2_ref, out_ref, acc_ref,
                       *, seq_len, seq_tile, mask_seq):
    """Grid = (batch_block, seq_block).  Seq axis is a reduction:
       accumulate f32 partial token-sums, finalize with fc1/relu/fc2."""
    s_idx = pl.program_id(1)

    @pl.when(s_idx == 0)
    def _():
        acc_ref[...] = jnp.zeros_like(acc_ref)

    # Partial sum over this sequence tile, accumulated in float32.
    # (1/S mean scale is pre-folded into w1t by the wrapper.)
    x = text_ref[...].astype(jnp.float32)                        # [TB, TS, 768]
    if mask_seq:
        # Ragged last tile: zero tokens beyond the true sequence length so the
        # unpadded HBM stream stays correct.  seq_len / seq_tile are static.
        tok = s_idx * seq_tile + jax.lax.broadcasted_iota(jnp.int32, x.shape, 1)
        x = jnp.where(tok < seq_len, x, 0.0)
    acc_ref[...] += jnp.sum(x, axis=1)

    @pl.when(s_idx == pl.num_programs(1) - 1)
    def _():
        text_sum = acc_ref[...]                                   # [TB, 768] f32
        # concat(text, video) @ W1  ==  text @ W1_text + video @ W1_video
        h = jnp.dot(text_sum, w1t_ref[...],
                    preferred_element_type=jnp.float32)
        h = h + jnp.dot(vid_ref[...], w1v_ref[...],
                        preferred_element_type=jnp.float32)
        h = h + b1_ref[...]                                       # [1,128] bcast
        h = jnp.maximum(h, 0.0)                                   # F.relu
        out = jnp.dot(h, w2_ref[...],
                      preferred_element_type=jnp.float32) + b2_ref[...]
        out_ref[...] = out.astype(out_ref.dtype)


def multimodal_head(text_hidden, video_feat, w1, b1, w2, b2, *,
                    tb=128, ts=64, text_vmem_budget=24 * 1024 * 1024):
    """Fusion head.

    text_hidden: [B, S, 768] (f32 or bf16)  — BERT last_hidden_state.  Streamed
                 unpadded; pass bf16 only if the producer already emits bf16.
    video_feat : [B, 400]                   — S3D features
    w1 : [768+400, 128] input-major fc1 weight (transpose of nn.Linear weight)
    b1 : [1, 128]
    w2 : [128, C] input-major fc2 weight
    b2 : [1, C]
    tb / ts    : batch / sequence tile.  ts is rounded to a multiple of 16 and
                 auto-capped so double-buffered text stays <= text_vmem_budget
                 (default 24 MiB: safe on v7x; raise on v5e/v6e if desired).
    """
    B, S, H = text_hidden.shape
    V = video_feat.shape[1]
    D = w1.shape[1]
    C = w2.shape[1]
    itemsize = jnp.dtype(text_hidden.dtype).itemsize

    # ---- tile selection --------------------------------------------------
    TB = min(tb, _round_up(B, 8))
    if B > 8 and pl.cdiv(B, TB) < 2:
        # v7x shards the "parallel" batch axis across 2 TensorCores; make sure
        # there are at least two batch blocks whenever the batch allows it.
        TB = _round_up(pl.cdiv(B, 2), 8)

    # Seq tile: multiple of 16 (dense bf16 [16,128] vreg packing), capped so
    # the double-buffered text tile stays within the VMEM budget.
    TS = max(16, _round_up(min(ts, S), 16))
    while TS > 16 and 2 * TB * TS * H * itemsize > text_vmem_budget:
        TS -= 16

    grid = (pl.cdiv(B, TB), pl.cdiv(S, TS))
    mask_seq = (S % TS) != 0   # only pay for in-kernel masking when ragged

    # Split fc1 weight into text/video halves; fold the 1/S mean scale into the
    # text half so the kernel only needs a sum over tokens.
    w1t = w1[:H, :].astype(jnp.float32) * (1.0 / S)
    w1v = w1[H:, :].astype(jnp.float32)

    # Lane-dense padding of the SMALL tensors only (video K-dim 400 -> 512,
    # classifier lanes C -> 128).  The dominant text tensor is not padded.
    Vp = _round_up(V, 128)
    Cp = _round_up(C, 128)
    vid_p = jnp.pad(video_feat.astype(jnp.float32), ((0, 0), (0, Vp - V)))
    w1v_p = jnp.pad(w1v, ((0, Vp - V), (0, 0)))
    b1_p = b1.astype(jnp.float32).reshape(1, D)
    w2_p = jnp.pad(w2.astype(jnp.float32), ((0, 0), (0, Cp - C)))
    b2_p = jnp.pad(b2.astype(jnp.float32).reshape(1, C), ((0, 0), (0, Cp - C)))

    # Advisory cost estimate: large memory-bound op (dominated by the text
    # stream); lets XLA overlap the BERT/S3D producers with this call.
    flops = 2 * B * (H + Vp) * D + 2 * B * D * Cp + B * S * H
    bytes_accessed = (B * S * H * itemsize          # text_hidden stream
                      + B * Vp * 4                  # video features
                      + (H + Vp) * D * 4 + D * 4    # fc1 weights + bias
                      + D * Cp * 4 + Cp * 4         # fc2 weights + bias
                      + B * Cp * 4)                 # output

    kernel = functools.partial(fusion_head_kernel,
                               seq_len=S, seq_tile=TS, mask_seq=mask_seq)

    out = pl.pallas_call(
        kernel,
        out_shape=jax.ShapeDtypeStruct((B, Cp), jnp.float32),
        grid=grid,
        in_specs=[
            # BERT hidden-state tile: streams over (batch, seq) grid, unpadded.
            pl.BlockSpec((TB, TS, H), lambda b, s: (b, s, 0)),
            # Video features: per batch block, resident across the seq axis.
            pl.BlockSpec((TB, Vp), lambda b, s: (b, 0)),
            # Weights / biases: constant index maps -> fetched once, resident.
            pl.BlockSpec((H, D), lambda b, s: (0, 0)),    # fc1 weight (text)
            pl.BlockSpec((Vp, D), lambda b, s: (0, 0)),   # fc1 weight (video)
            pl.BlockSpec((1, D), lambda b, s: (0, 0)),    # fc1 bias
            pl.BlockSpec((D, Cp), lambda b, s: (0, 0)),   # fc2 weight
            pl.BlockSpec((1, Cp), lambda b, s: (0, 0)),   # fc2 bias
        ],
        out_specs=pl.BlockSpec((TB, Cp), lambda b, s: (b, 0)),
        scratch_shapes=[pltpu.VMEM((TB, H), jnp.float32)],   # f32 token-sum acc
        compiler_params=pltpu.CompilerParams(
            dimension_semantics=("parallel", "arbitrary"),
            vmem_limit_bytes=32 * 1024 * 1024),
        cost_estimate=pl.CostEstimate(
            flops=flops, transcendentals=0, bytes_accessed=bytes_accessed),
    )(text_hidden, vid_p, w1t, w1v_p, b1_p, w2_p, b2_p)

    return out[:, :C]


def _linear_init(key, fan_in, fan_out):
    """Deterministic nn.Linear-style init: U(-1/sqrt(fan_in), 1/sqrt(fan_in)).
    Weight stored input-major [in, out] (transpose of the PyTorch convention)."""
    kw, kb = jax.random.split(key)
    bound = 1.0 / jnp.sqrt(float(fan_in))
    w = jax.random.uniform(kw, (fan_in, fan_out), jnp.float32, -bound, bound)
    b = jax.random.uniform(kb, (1, fan_out), jnp.float32, -bound, bound)
    return w, b


def reference_head(text_hidden, video_feat, w1, b1, w2, b2):
    text_mean = jnp.mean(text_hidden.astype(jnp.float32), axis=1)
    combined = jnp.concatenate(
        [text_mean, video_feat.astype(jnp.float32)], axis=1)
    h = jax.nn.relu(combined @ w1 + b1)
    return h @ w2 + b2


if __name__ == "__main__":
    key = jax.random.PRNGKey(0)
    k_text, k_vid, k_fc1, k_fc2 = jax.random.split(key, 4)

    # fc1: Linear(768 + 400, 128); fc2: Linear(128, num_classes).
    w1, b1 = _linear_init(k_fc1, TEXT_DIM + VIDEO_DIM, HIDDEN)
    w2, b2 = _linear_init(k_fc2, HIDDEN, NUM_CLASSES)

    # ---- test 1: tiny batch / short sequence, bf16 text (producer-emitted) --
    B, S = 2, 8
    text_hidden = jax.random.normal(
        k_text, (B, S, TEXT_DIM), jnp.float32).astype(jnp.bfloat16)
    video_feat = jax.random.normal(k_vid, (B, VIDEO_DIM), jnp.float32)

    out = multimodal_head(text_hidden, video_feat, w1, b1, w2, b2)
    out = jax.block_until_ready(out)
    ref = reference_head(text_hidden, video_feat, w1, b1, w2, b2)
    assert out.shape == (B, NUM_CLASSES)
    assert jnp.allclose(out, ref, atol=1e-4, rtol=1e-3), \
        "mismatch vs JAX reference (test 1)"

    # ---- test 2: ragged seq length (exercises in-kernel seq masking), f32 --
    B2, S2 = 4, 40
    text_hidden2 = jax.random.normal(k_text, (B2, S2, TEXT_DIM), jnp.float32)
    video_feat2 = jax.random.normal(k_vid, (B2, VIDEO_DIM), jnp.float32)

    out2 = multimodal_head(text_hidden2, video_feat2, w1, b1, w2, b2, ts=16)
    out2 = jax.block_until_ready(out2)
    ref2 = reference_head(text_hidden2, video_feat2, w1, b1, w2, b2)
    assert out2.shape == (B2, NUM_CLASSES)
    assert jnp.allclose(out2, ref2, atol=1e-4, rtol=1e-3), \
        "mismatch vs JAX reference (test 2)"

    print("KERNEL_OK")
</pallas_src>

<mosaic_0001>
module attributes {stable_mosaic.version = 11 : i64} {
  func.func @fusion_head_kernel(%arg0: i32, %arg1: i32, %arg2: memref<8x16x768xbf16, #tpu.memory_space<vmem>>, %arg3: memref<8x512xf32, #tpu.memory_space<vmem>>, %arg4: memref<768x128xf32, #tpu.memory_space<vmem>>, %arg5: memref<512x128xf32, #tpu.memory_space<vmem>>, %arg6: memref<1x128xf32, #tpu.memory_space<vmem>>, %arg7: memref<128x128xf32, #tpu.memory_space<vmem>>, %arg8: memref<1x128xf32, #tpu.memory_space<vmem>>, %arg9: memref<8x128xf32, #tpu.memory_space<vmem>>, %arg10: memref<8x768xf32, #tpu.memory_space<vmem>>) attributes {dimension_semantics = [#tpu.dimension_semantics<parallel>, #tpu.dimension_semantics<arbitrary>], iteration_bounds = array<i64: 1, 1>, scalar_prefetch = 0 : i64, scratch_operands = 1 : i64, tpu.core_type = #tpu.core_type<tc>, window_params = [{transform_indices = @transform_0, window_bounds = array<i64: 8, 16, 768>}, {transform_indices = @transform_1, window_bounds = array<i64: 8, 512>}, {pipeline_mode = #tpu.pipeline_mode<synchronous>, transform_indices = @transform_2, window_bounds = array<i64: 768, 128>}, {pipeline_mode = #tpu.pipeline_mode<synchronous>, transform_indices = @transform_3, window_bounds = array<i64: 512, 128>}, {pipeline_mode = #tpu.pipeline_mode<synchronous>, transform_indices = @transform_4, window_bounds = array<i64: 1, 128>}, {pipeline_mode = #tpu.pipeline_mode<synchronous>, transform_indices = @transform_5, window_bounds = array<i64: 128, 128>}, {pipeline_mode = #tpu.pipeline_mode<synchronous>, transform_indices = @transform_6, window_bounds = array<i64: 1, 128>}, {transform_indices = @transform_7, window_bounds = array<i64: 8, 128>}]} {
    %c0_i32 = arith.constant 0 : i32
    %0 = arith.cmpi eq, %arg1, %c0_i32 : i32
    %1 = arith.extui %0 : i1 to i32
    %c0_i32_0 = arith.constant 0 : i32
    %2 = arith.cmpi ne, %1, %c0_i32_0 : i32
    scf.if %2 {
      %cst_10 = arith.constant 0.000000e+00 : f32
      %20 = vector.broadcast %cst_10 : f32 to vector<8x768xf32>
      %c0_11 = arith.constant 0 : index
      %c0_12 = arith.constant 0 : index
      %21 = vector.load %arg10[%c0_11, %c0_12] : memref<8x768xf32, #tpu.memory_space<vmem>>, vector<8x768xf32>
      tpu.vector_store %arg10[%c0_11, %c0_12], %20 {strides = array<i32>} : memref<8x768xf32, #tpu.memory_space<vmem>>, vector<8x768xf32>,
    } else {
    }
    %c0 = arith.constant 0 : index
    %c0_1 = arith.constant 0 : index
    %c0_2 = arith.constant 0 : index
    %3 = vector.load %arg2[%c0, %c0_1, %c0_2] : memref<8x16x768xbf16, #tpu.memory_space<vmem>>, vector<8x16x768xbf16>
    %4 = arith.extf %3 : vector<8x16x768xbf16> to vector<8x16x768xf32>
    %c16_i32 = arith.constant 16 : i32
    %5 = arith.muli %arg1, %c16_i32 : i32
    %6 = tpu.iota {dimensions = array<i32: 1>} : vector<8x16x768xi32>
    %7 = vector.broadcast %5 : i32 to vector<8x16x768xi32>
    %8 = arith.addi %7, %6 : vector<8x16x768xi32>
    %c8_i32 = arith.constant 8 : i32
    %9 = vector.broadcast %c8_i32 : i32 to vector<8x16x768xi32>
    %10 = arith.cmpi slt, %8, %9 : vector<8x16x768xi32>
    %cst = arith.constant 0.000000e+00 : f32
    %11 = vector.broadcast %cst : f32 to vector<8x16x768xf32>
    %12 = arith.select %10, %4, %11 : vector<8x16x768xi1>, vector<8x16x768xf32>
    %c0_3 = arith.constant 0 : index
    %c0_4 = arith.constant 0 : index
    %13 = vector.load %arg10[%c0_3, %c0_4] : memref<8x768xf32, #tpu.memory_space<vmem>>, vector<8x768xf32>
    %cst_5 = arith.constant dense<0.000000e+00> : vector<8x768xf32>
    %14 = vector.multi_reduction <add>, %12, %cst_5 [1] : vector<8x16x768xf32> to vector<8x768xf32>
    %15 = arith.addf %13, %14 : vector<8x768xf32>
    %c0_6 = arith.constant 0 : index
    %c0_7 = arith.constant 0 : index
    %16 = vector.load %arg10[%c0_6, %c0_7] : memref<8x768xf32, #tpu.memory_space<vmem>>, vector<8x768xf32>
    tpu.vector_store %arg10[%c0_6, %c0_7], %15 {strides = array<i32>} : memref<8x768xf32, #tpu.memory_space<vmem>>, vector<8x768xf32>,
    %c0_i32_8 = arith.constant 0 : i32
    %17 = arith.cmpi eq, %arg1, %c0_i32_8 : i32
    %18 = arith.extui %17 : i1 to i32
    %c0_i32_9 = arith.constant 0 : i32
    %19 = arith.cmpi ne, %18, %c0_i32_9 : i32
    scf.if %19 {
      %c0_10 = arith.constant 0 : index
      %c0_11 = arith.constant 0 : index
      %20 = vector.load %arg10[%c0_10, %c0_11] : memref<8x768xf32, #tpu.memory_space<vmem>>, vector<8x768xf32>
      %c0_12 = arith.constant 0 : index
      %c0_13 = arith.constant 0 : index
      %21 = vector.load %arg4[%c0_12, %c0_13] : memref<768x128xf32, #tpu.memory_space<vmem>>, vector<768x128xf32>
      %cst_14 = arith.constant dense<0.000000e+00> : vector<8x128xf32>
      %22 = tpu.matmul %20, %21, %cst_14 {dimension_numbers = #tpu.dot_dimension_numbers<[1], [0], [0], [1], [0, 0, 1, 1], [], []>} : vector<8x768xf32>, vector<768x128xf32>, vector<8x128xf32> -> vector<8x128xf32>
      %c0_15 = arith.constant 0 : index
      %c0_16 = arith.constant 0 : index
      %23 = vector.load %arg3[%c0_15, %c0_16] : memref<8x512xf32, #tpu.memory_space<vmem>>, vector<8x512xf32>
      %c0_17 = arith.constant 0 : index
      %c0_18 = arith.constant 0 : index
      %24 = vector.load %arg5[%c0_17, %c0_18] : memref<512x128xf32, #tpu.memory_space<vmem>>, vector<512x128xf32>
      %cst_19 = arith.constant dense<0.000000e+00> : vector<8x128xf32>
      %25 = tpu.matmul %23, %24, %cst_19 {dimension_numbers = #tpu.dot_dimension_numbers<[1], [0], [0], [1], [0, 0, 1, 1], [], []>} : vector<8x512xf32>, vector<512x128xf32>, vector<8x128xf32> -> vector<8x128xf32>
      %26 = arith.addf %22, %25 : vector<8x128xf32>
      %c0_20 = arith.constant 0 : index
      %c0_21 = arith.constant 0 : index
      %27 = vector.load %arg6[%c0_20, %c0_21] : memref<1x128xf32, #tpu.memory_space<vmem>>, vector<1x128xf32>
      %28 = vector.broadcast %27 : vector<1x128xf32> to vector<8x128xf32>
      %29 = arith.addf %26, %28 : vector<8x128xf32>
      %cst_22 = arith.constant 0.000000e+00 : f32
      %30 = vector.broadcast %cst_22 : f32 to vector<8x128xf32>
      %31 = arith.maximumf %29, %30 : vector<8x128xf32>
      %c0_23 = arith.constant 0 : index
      %c0_24 = arith.constant 0 : index
      %32 = vector.load %arg7[%c0_23, %c0_24] : memref<128x128xf32, #tpu.memory_space<vmem>>, vector<128x128xf32>
      %cst_25 = arith.constant dense<0.000000e+00> : vector<8x128xf32>
      %33 = tpu.matmul %31, %32, %cst_25 {dimension_numbers = #tpu.dot_dimension_numbers<[1], [0], [0], [1], [0, 0, 1, 1], [], []>} : vector<8x128xf32>, vector<128x128xf32>, vector<8x128xf32> -> vector<8x128xf32>
      %c0_26 = arith.constant 0 : index
      %c0_27 = arith.constant 0 : index
      %34 = vector.load %arg8[%c0_26, %c0_27] : memref<1x128xf32, #tpu.memory_space<vmem>>, vector<1x128xf32>
      %35 = vector.broadcast %34 : vector<1x128xf32> to vector<8x128xf32>
      %36 = arith.addf %33, %35 : vector<8x128xf32>
      %c0_28 = arith.constant 0 : index
      %c0_29 = arith.constant 0 : index
      %37 = vector.load %arg9[%c0_28, %c0_29] : memref<8x128xf32, #tpu.memory_space<vmem>>, vector<8x128xf32>
      tpu.vector_store %arg9[%c0_28, %c0_29], %36 {strides = array<i32>} : memref<8x128xf32, #tpu.memory_space<vmem>>, vector<8x128xf32>,
    } else {
    }
    return
  }
  func.func @transform_0(%arg0: i32, %arg1: i32) -> (i32, i32, i32) {
    %c0_i32 = arith.constant 0 : i32
    %c0_i32_0 = arith.constant 0 : i32
    return %arg0, %arg1, %c0_i32 : i32, i32, i32
  }
  func.func @transform_1(%arg0: i32, %arg1: i32) -> (i32, i32) {
    %c0_i32 = arith.constant 0 : i32
    %c0_i32_0 = arith.constant 0 : i32
    return %arg0, %c0_i32 : i32, i32
  }
  func.func @transform_2(%arg0: i32, %arg1: i32) -> (i32, i32) {
    %c0_i32 = arith.constant 0 : i32
    %c0_i32_0 = arith.constant 0 : i32
    %c0_i32_1 = arith.constant 0 : i32
    return %c0_i32, %c0_i32_0 : i32, i32
  }
  func.func @transform_3(%arg0: i32, %arg1: i32) -> (i32, i32) {
    %c0_i32 = arith.constant 0 : i32
    %c0_i32_0 = arith.constant 0 : i32
    %c0_i32_1 = arith.constant 0 : i32
    return %c0_i32, %c0_i32_0 : i32, i32
  }
  func.func @transform_4(%arg0: i32, %arg1: i32) -> (i32, i32) {
    %c0_i32 = arith.constant 0 : i32
    %c0_i32_0 = arith.constant 0 : i32
    %c0_i32_1 = arith.constant 0 : i32
    return %c0_i32, %c0_i32_0 : i32, i32
  }
  func.func @transform_5(%arg0: i32, %arg1: i32) -> (i32, i32) {
    %c0_i32 = arith.constant 0 : i32
    %c0_i32_0 = arith.constant 0 : i32
    %c0_i32_1 = arith.constant 0 : i32
    return %c0_i32, %c0_i32_0 : i32, i32
  }
  func.func @transform_6(%arg0: i32, %arg1: i32) -> (i32, i32) {
    %c0_i32 = arith.constant 0 : i32
    %c0_i32_0 = arith.constant 0 : i32
    %c0_i32_1 = arith.constant 0 : i32
    return %c0_i32, %c0_i32_0 : i32, i32
  }
  func.func @transform_7(%arg0: i32, %arg1: i32) -> (i32, i32) {
    %c0_i32 = arith.constant 0 : i32
    %c0_i32_0 = arith.constant 0 : i32
    return %arg0, %c0_i32 : i32, i32
  }
}

</mosaic_0001>

<bundles_post_ra>
// kernel: tpu_custom_call.1
= control target key start
LH: loop header
LB: loop body
LE: loop exit
PB: predicated region body
PF: predicated region fallthrough
CT: control target
= control target key end

     0   :  { %12 = vsyncpa [#allocation4], 0  ;;  %s2138_s0 = inlined_call_operand.hbm [shape: bf16[2,8,768], index: 0, kind: input, shape index: {}]   ;;  %s2139_s1 = inlined_call_operand.hbm [shape: f32[2,512], index: 1, kind: input, shape index: {}]   ;;  %s2140_s2 = inlined_call_operand.hbm [shape: f32[768,128], index: 2, kind: input, shape index: {}]   ;;  %s2141_s3 = inlined_call_operand.hbm [shape: f32[512,128], index: 3, kind: input, shape index: {}]   ;;  %s2142_s4 = inlined_call_operand.vmem [shape: f32[1,128], index: 4, kind: input, shape index: {}]   ;;  %s2143_s5 = inlined_call_operand.hbm [shape: f32[128,128], index: 5, kind: input, shape index: {}]   ;;  %s2144_s6 = inlined_call_operand.vmem [shape: f32[1,128], index: 6, kind: input, shape index: {}]   ;;  %s2145_s7 = inlined_call_operand.hbm [shape: f32[2,128], index: 7, kind: output, shape index: {}]  }
   0x1   :  { %13 = vsyncpa [#allocation7], 0 }
   0x2   :  { %14 = vsyncpa [#allocation10], 0 }
   0x3   :  { %15 = vsyncpa [#allocation5], 0 }
   0x4   :  { %20 = vsyncadd [#allocation4], 5376  ;;  %s25_s24 = sld [smem:[#allocation0]]   ;;  %s1889_s25 = smov [#allocation3]  }
   0x5   :  { %s33_s26 = sshll.u32 %s1889_s25, 4  ;;  %s1890_s27 = smov 384   ;;  %s34_s26 = int_to_ptr.vmem [resolvable:$true] %s33_s26 }
   0x6   :  { %40 = sst [smem:[#allocation14]] %s1890_s27  ;;  %s1891_s28 = smov 768  }
   0x7   :  { %42 = sst [smem:[#allocation14 + $0x1]] %s1891_s28  ;;  %s1892_s29 = smov 1  }
   0x8   :  { %44 = sst [smem:[#allocation14 + $0x2]] %s1892_s29  ;;  %s1893_s9 = smov 24  }
   0x9   :  { %46 = sst [smem:[#allocation14 + $0x3]] %s1890_s27  ;;  %s1894_s10 = smov [#allocation4]  }
   0xa   :  { %s1525_s30 = sshll.u32 %s25_s24, 26  ;;  %48 = sst [smem:[#allocation14 + $0x4]] %s1890_s27 }
   0xb   :  { %s1526_s8 = sadd.s32 134217728, %s1525_s30  ;;  %50 = sst [smem:[#allocation14 + $0x5]] %s1893_s9 }
   0xc   :  { %s1895_s11 = smov 131072  }
   0xd   :  { %52 = dma.general %s2138_s0, 768, %s34_s26, %s1894_s10, %s1895_s11, [#allocation14], %s1526_s8, 0  }
   0xe   :  { %57 = vsyncadd [#allocation7], 384  ;;  %s1896_s14 = smov [#allocation6]  }
   0xf   :  { %s58_s15 = sshll.u32 %s1896_s14, 4  ;;  %s59_s15 = int_to_ptr.vmem [resolvable:$true] %s58_s15 }
  0x10   :  { %s1789_s16 = scalar_lea.vmem %s59_s15, 128  ;;  %s1793_s17 = scalar_lea.vmem %s59_s15, 512 }
  0x11   :  { %p1790_p0 = scmp.ne.s32.totalorder %s59_s15, %s1789_s16  ;;  %p1794_p1 = scmp.lt.s32.totalorder %s59_s15, %s59_s15 }
  0x12   :  { %p1795_p2 = scmp.lt.s32.totalorder %s1793_s17, %s1789_s16 }
  0x14   :  { %p1796_p3 = por %p1795_p2, %p1794_p1 }
  0x16   :  { %p1797_p4 = pnand %p1796_p3, %p1790_p0 }
  0x18   :  { %1800 = shalt.err (!%p1797_p4)
}
  0x19   :  { %s1897_s18 = smov 128   ;;  %s1898_s19 = smov 8  }
  0x1a   :  { %64 = dma.hbm_to_vmem [thread:$0]  %s2139_s1, 128, %s59_s15, [#allocation7], %s1897_s18, %s1897_s18, %s1898_s19  }
  0x1b   :  { %s1899_s0 = smov [#allocation9]   ;;  %s1900_s23 = smov [#allocation8]  }
  0x1c   :  { %s82_s22 = sshll.u32 %s1899_s0, 4  ;;  %s70_s24 = sshll.u32 %s1900_s23, 4  ;;  %s83_s22 = int_to_ptr.vmem [resolvable:$true] %s82_s22  ;;  %s71_s24 = int_to_ptr.vmem [resolvable:$true] %s70_s24 }
  0x1d   :  { %s1809_s25 = scalar_lea.vmem %s83_s22, 8192  ;;  %p1814_p6 = scmp.lt.s32.totalorder %s83_s22, %s83_s22 }
  0x1e   :  { %p1810_p5 = scmp.ne.s32.totalorder %s83_s22, %s1809_s25  ;;  %p1815_p7 = scmp.lt.s32.totalorder %s1809_s25, %s1809_s25 }
  0x20   :  { %p1816_p8 = por %p1815_p7, %p1814_p6 }
  0x22   :  { %p1817_p9 = pnand %p1816_p8, %p1810_p5 }
  0x24   :  { %1820 = shalt.err (!%p1817_p9)
}
  0x25   :  { %88 = dma.hbm_to_vmem [thread:$0]  %s2141_s3, 8192, %s83_s22, [#allocation10], %s1897_s18, %s1897_s18, %s1898_s19  }
  0x26   :  { %s1829_s1 = scalar_lea.vmem %s71_s24, 12288  ;;  %p1834_p11 = scmp.lt.s32.totalorder %s71_s24, %s71_s24 }
  0x27   :  { %p1830_p10 = scmp.ne.s32.totalorder %s71_s24, %s1829_s1  ;;  %p1835_p12 = scmp.lt.s32.totalorder %s1829_s1, %s1829_s1 }
  0x29   :  { %p1836_p13 = por %p1835_p12, %p1834_p11 }
  0x2b   :  { %p1837_p0 = pnand %p1836_p13, %p1830_p10 }
  0x2d   :  { %1840 = shalt.err (!%p1837_p0)
}
  0x2e   :  { %76 = dma.hbm_to_vmem [thread:$0]  %s2140_s2, 12288, %s71_s24, [#allocation7], %s1897_s18, %s1897_s18, %s1898_s19  }
  0x2f   :  { %s1901_s30 = smov [#allocation11]  }
  0x30   :  { %s96_s8 = sshll.u32 %s1901_s30, 4  ;;  %s97_s8 = int_to_ptr.vmem [resolvable:$true] %s96_s8 }
  0x31   :  { %s1849_s9 = scalar_lea.vmem %s97_s8, 2048  ;;  %p1854_p2 = scmp.lt.s32.totalorder %s97_s8, %s97_s8 }
  0x32   :  { %p1850_p1 = scmp.ne.s32.totalorder %s97_s8, %s1849_s9  ;;  %p1855_p3 = scmp.lt.s32.totalorder %s1849_s9, %s1849_s9 }
  0x34   :  { %p1856_p4 = por %p1855_p3, %p1854_p2 }
  0x36   :  { %p1857_p5 = pnand %p1856_p4, %p1850_p1 }
  0x38   :  { %1860 = shalt.err (!%p1857_p5)
}
  0x39   :  { %102 = dma.hbm_to_vmem [thread:$0]  %s2143_s5, 2048, %s97_s8, [#allocation10], %s1897_s18, %s1897_s18, %s1898_s19  }
  0x3a   :  { %1881 = dma.done.wait [#allocation4], 6144  }
  0x3b   :  { %1882 = vsyncadd [#allocation4], 4294961152 }
  0x3c   :  { %1883 = dma.done.wait [#allocation7], 12800  }
  0x3d   :  { %1884 = vsyncadd [#allocation7], 4294954496 }
  0x3e   :  { %1885 = dma.done.wait [#allocation10], 10240  }
  0x3f   :  { %1886 = vsyncadd [#allocation10], 4294957056  ;;  %v976_v0 = vld [vmem:[#allocation9 + $0xf8] sm:$0xff]  ;;  %v975_v4 = vld [vmem:[#allocation9 + $0xf0] sm:$0xff]  ;;  %v1902_v30 = vmov 1983009808   ;;  %v1020_v32 = vlaneseq }
  0x40   :  { %v1008_v1 = vld [vmem:[#allocation9 + $0x1f8] sm:$0xff]  ;;  %1529 = vmatprep.subr.mxu0 %v976_v0  ;;  %v1007_v5 = vld [vmem:[#allocation9 + $0x1f0] sm:$0xff]  ;;  %v974_v8 = vld [vmem:[#allocation9 + $0xe8] sm:$0xff]  ;;  %v1018_v31 = vunpack.c.l.s4 %v1902_v30  ;;  %vm769_vm0 = vcmask 1041409   ;;  %vm771_vm1 = vcmask 1042434   ;;  %vm773_vm2 = vcmask 1043459  }
  0x41   :  { %v960_v2 = vld [vmem:[#allocation9 + $0x78] sm:$0xff]  ;;  %1564 = vmatprep.subr.mxu1 %v1008_v1  ;;  %v959_v6 = vld [vmem:[#allocation9 + $0x70] sm:$0xff]  ;;  %v1006_v9 = vld [vmem:[#allocation9 + $0x1e8] sm:$0xff]  ;;  %v1021_v42 = vshrl.u32 %v1020_v32, 7  ;;  %vm775_vm3 = vcmask 1044484   ;;  %vm777_vm4 = vcmask 1045509  }
  0x42   :  { %v992_v3 = vld [vmem:[#allocation9 + $0x178] sm:$0xff]  ;;  %1530 = vmatpush3.msra.mxu0 %v960_v2  ;;  %v991_v7 = vld [vmem:[#allocation9 + $0x170] sm:$0xff]  ;;  %v958_v10 = vld [vmem:[#allocation9 + $0x68] sm:$0xff]  ;;  %v1019_v41 = vunpack.c.0.s8 %v1018_v31  ;;  %vm779_vm5 = vcmask 1046534   ;;  %vm781_vm6 = vcmask 1047559   ;;  %vm1904_vm7 = vmmov 0  }
  0x43   :  { %1565 = vmatpush3.msra.mxu1 %v992_v3  ;;  %1531 = vmatprep.subr.mxu0 %v975_v4  ;;  %v990_v11 = vld [vmem:[#allocation9 + $0x168] sm:$0xff]  ;;  %v973_v12 = vld [vmem:[#allocation9 + $0xe0] sm:$0xff]  ;;  %v972_v16 = vld [vmem:[#allocation9 + $0xd8] sm:$0xff] }
  0x44   :  { %1566 = vmatprep.subr.mxu1 %v1007_v5  ;;  %1532 = vmatpush3.msra.mxu0 %v959_v6  ;;  %v1005_v13 = vld [vmem:[#allocation9 + $0x1e0] sm:$0xff]  ;;  %v1004_v17 = vld [vmem:[#allocation9 + $0x1d8] sm:$0xff]  ;;  %v971_v20 = vld [vmem:[#allocation9 + $0xd0] sm:$0xff]  ;;  %v1022_v55 = vsub.s32 %v1019_v41, %v1021_v42 }
  0x45   :  { %1567 = vmatpush3.msra.mxu1 %v991_v7  ;;  %1533 = vmatprep.subr.mxu0 %v974_v8  ;;  %v957_v14 = vld [vmem:[#allocation9 + $0x60] sm:$0xff]  ;;  %v956_v18 = vld [vmem:[#allocation9 + $0x58] sm:$0xff]  ;;  %v1003_v21 = vld [vmem:[#allocation9 + $0x1d0] sm:$0xff] }
  0x46   :  { %1568 = vmatprep.subr.mxu1 %v1006_v9  ;;  %v989_v15 = vld [vmem:[#allocation9 + $0x160] sm:$0xff]  ;;  %1534 = vmatpush3.msra.mxu0 %v958_v10  ;;  %v988_v19 = vld [vmem:[#allocation9 + $0x158] sm:$0xff]  ;;  %v955_v22 = vld [vmem:[#allocation9 + $0x50] sm:$0xff] }
  0x47   :  { %1569 = vmatpush3.msra.mxu1 %v990_v11  ;;  %1535 = vmatprep.subr.mxu0 %v973_v12  ;;  %v987_v23 = vld [vmem:[#allocation9 + $0x150] sm:$0xff]  ;;  %v970_v24 = vld [vmem:[#allocation9 + $0xc8] sm:$0xff]  ;;  %v969_v28 = vld [vmem:[#allocation9 + $0xc0] sm:$0xff] }
  0x48   :  { %1570 = vmatprep.subr.mxu1 %v1005_v13  ;;  %1536 = vmatpush3.msra.mxu0 %v957_v14  ;;  %v1002_v25 = vld [vmem:[#allocation9 + $0x1c8] sm:$0xff]  ;;  %v1001_v29 = vld [vmem:[#allocation9 + $0x1c0] sm:$0xff]  ;;  %v968_v35 = vld [vmem:[#allocation9 + $0xb8] sm:$0xff] }
  0x49   :  { %1571 = vmatpush3.msra.mxu1 %v989_v15  ;;  %1537 = vmatprep.subr.mxu0 %v972_v16  ;;  %v954_v26 = vld [vmem:[#allocation9 + $0x48] sm:$0xff]  ;;  %v953_v33 = vld [vmem:[#allocation9 + $0x40] sm:$0xff]  ;;  %v1000_v36 = vld [vmem:[#allocation9 + $0x1b8] sm:$0xff] }
  0x4a   :  { %1572 = vmatprep.subr.mxu1 %v1004_v17  ;;  %1538 = vmatpush3.msra.mxu0 %v956_v18  ;;  %v986_v27 = vld [vmem:[#allocation9 + $0x148] sm:$0xff]  ;;  %v985_v34 = vld [vmem:[#allocation9 + $0x140] sm:$0xff]  ;;  %v952_v37 = vld [vmem:[#allocation9 + $0x38] sm:$0xff] }
  0x4b   :  { %1573 = vmatpush3.msra.mxu1 %v988_v19  ;;  %1539 = vmatprep.subr.mxu0 %v971_v20  ;;  %v984_v38 = vld [vmem:[#allocation9 + $0x138] sm:$0xff]  ;;  %v967_v39 = vld [vmem:[#allocation9 + $0xb0] sm:$0xff]  ;;  %v966_v45 = vld [vmem:[#allocation9 + $0xa8] sm:$0xff] }
  0x4c   :  { %1574 = vmatprep.subr.mxu1 %v1003_v21  ;;  %1540 = vmatpush3.msra.mxu0 %v955_v22  ;;  %v999_v40 = vld [vmem:[#allocation9 + $0x1b0] sm:$0xff]  ;;  %v998_v46 = vld [vmem:[#allocation9 + $0x1a8] sm:$0xff]  ;;  %v965_v49 = vld [vmem:[#allocation9 + $0xa0] sm:$0xff] }
  0x4d   :  { %1575 = vmatpush3.msra.mxu1 %v987_v23  ;;  %1541 = vmatprep.subr.mxu0 %v970_v24  ;;  %v951_v43 = vld [vmem:[#allocation9 + $0x30] sm:$0xff]  ;;  %v950_v47 = vld [vmem:[#allocation9 + $0x28] sm:$0xff]  ;;  %v997_v50 = vld [vmem:[#allocation9 + $0x1a0] sm:$0xff] }
  0x4e   :  { %1576 = vmatprep.subr.mxu1 %v1002_v25  ;;  %1542 = vmatpush3.msra.mxu0 %v954_v26  ;;  %v983_v44 = vld [vmem:[#allocation9 + $0x130] sm:$0xff]  ;;  %v982_v48 = vld [vmem:[#allocation9 + $0x128] sm:$0xff]  ;;  %v949_v51 = vld [vmem:[#allocation9 + $0x20] sm:$0xff] }
  0x4f   :  { %1577 = vmatpush3.msra.mxu1 %v986_v27  ;;  %1543 = vmatprep.subr.mxu0 %v969_v28  ;;  %v981_v52 = vld [vmem:[#allocation9 + $0x120] sm:$0xff]  ;;  %v964_v53 = vld [vmem:[#allocation9 + $0x98] sm:$0xff]  ;;  %v963_v62 = vld [vmem:[#allocation9 + $0x90] sm:$0xff] }
  0x50   :  { %1578 = vmatprep.subr.mxu1 %v1001_v29  ;;  %1544 = vmatpush3.msra.mxu0 %v953_v33  ;;  %v996_v54 = vld [vmem:[#allocation9 + $0x198] sm:$0xff]  ;;  %v1775_v57 = vld [vmem:[#allocation6] ss:$8 sps:$4 sm:$0xff]   ;;  %v1779_v60 = vld [vmem:[#allocation6 + $0x4] ss:$8 sps:$4 sm:$0xff]  }
  0x51   :  { %1579 = vmatpush3.msra.mxu1 %v985_v34  ;;  %1545 = vmatprep.subr.mxu0 %v968_v35  ;;  %v948_v56 = vld [vmem:[#allocation9 + $0x18] sm:$0xff]  ;;  %v995_v63 = vld [vmem:[#allocation9 + $0x190] sm:$0xff]  ;;  %v1023_v0 = vrot.slane %v1775_v57, %v1022_v55  ;;  %v1030_v4 = vrot.slane %v1779_v60, %v1022_v55  ;;  %v962_v6 = vld [vmem:[#allocation9 + $0x88] sm:$0xff] }
  0x52   :  { %1580 = vmatprep.subr.mxu1 %v1000_v36  ;;  %1546 = vmatpush3.msra.mxu0 %v952_v37  ;;  %v1777_v58 = vld [vmem:[#allocation6 + $0x10] ss:$8 sps:$4 sm:$0xff]   ;;  %v1780_v61 = vld [vmem:[#allocation6 + $0x14] ss:$8 sps:$4 sm:$0xff]   ;;  %v994_v7 = vld [vmem:[#allocation9 + $0x188] sm:$0xff] }
  0x53   :  { %1581 = vmatpush3.msra.mxu1 %v984_v38  ;;  %1547 = vmatprep.subr.mxu0 %v967_v39  ;;  %v980_v59 = vld [vmem:[#allocation9 + $0x118] sm:$0xff]  ;;  %v1037_v1 = vrot.slane %v1777_v58, %v1022_v55  ;;  %v947_v2 = vld [vmem:[#allocation9 + $0x10] sm:$0xff]  ;;  %v1044_v5 = vrot.slane %v1780_v61, %v1022_v55  ;;  %v946_v8 = vld [vmem:[#allocation9 + $0x8] sm:$0xff] }
  0x54   :  { %1582 = vmatprep.subr.mxu1 %v999_v40  ;;  %1548 = vmatpush3.msra.mxu0 %v951_v43  ;;  %v979_v3 = vld [vmem:[#allocation9 + $0x110] sm:$0xff]  ;;  %v978_v9 = vld [vmem:[#allocation9 + $0x108] sm:$0xff]  ;;  %v961_v10 = vld [vmem:[#allocation9 + $0x80] sm:$0xff] }
  0x55   :  { %1583 = vmatpush3.msra.mxu1 %v983_v44  ;;  %1549 = vmatprep.subr.mxu0 %v966_v45  ;;  %v993_v11 = vld [vmem:[#allocation9 + $0x180] sm:$0xff]  ;;  %v1046_v12 = vcombine.high %v1023_v0, %v1037_v1  ;;  %v1048_v14 = vcombine.high %v1030_v4, %v1044_v5  ;;  %v1045_v16 = vcombine.low %v1023_v0, %v1037_v1  ;;  %v876_v18 = vld [vmem:[#allocation8 + $0xf8] sm:$0xff]  ;;  %v875_v22 = vld [vmem:[#allocation8 + $0xf0] sm:$0xff] }
  0x56   :  { %1584 = vmatprep.subr.mxu1 %v998_v46  ;;  %1550 = vmatpush3.msra.mxu0 %v950_v47  ;;  %v945_v13 = vld [vmem:[#allocation9] sm:$0xff]  ;;  %v1047_v17 = vcombine.low %v1030_v4, %v1044_v5  ;;  %v908_v19 = vld [vmem:[#allocation8 + $0x1f8] sm:$0xff]  ;;  %v907_v23 = vld [vmem:[#allocation8 + $0x1f0] sm:$0xff] }
  0x57   :  { %1585 = vmatpush3.msra.mxu1 %v982_v48  ;;  %1551 = vmatprep.subr.mxu0 %v965_v49  ;;  %v977_v15 = vld [vmem:[#allocation9 + $0x100] sm:$0xff]  ;;  %v860_v20 = vld [vmem:[#allocation8 + $0x78] sm:$0xff]  ;;  %v859_v24 = vld [vmem:[#allocation8 + $0x70] sm:$0xff] }
  0x58   :  { %1586 = vmatprep.subr.mxu1 %v997_v50  ;;  %1552 = vmatpush3.msra.mxu0 %v949_v51  ;;  %v892_v21 = vld [vmem:[#allocation8 + $0x178] sm:$0xff]  ;;  %v891_v25 = vld [vmem:[#allocation8 + $0x170] sm:$0xff]  ;;  %v874_v26 = vld [vmem:[#allocation8 + $0xe8] sm:$0xff] }
  0x59   :  { %1587 = vmatpush3.msra.mxu1 %v981_v52  ;;  %1553 = vmatprep.subr.mxu0 %v964_v53  ;;  %v906_v27 = vld [vmem:[#allocation8 + $0x1e8] sm:$0xff]  ;;  %v873_v30 = vld [vmem:[#allocation8 + $0xe0] sm:$0xff]  ;;  %v872_v34 = vld [vmem:[#allocation8 + $0xd8] sm:$0xff] }
  0x5a   :  { %1588 = vmatprep.subr.mxu1 %v996_v54  ;;  %1554 = vmatpush3.msra.mxu0 %v948_v56  ;;  %v858_v28 = vld [vmem:[#allocation8 + $0x68] sm:$0xff]  ;;  %v905_v31 = vld [vmem:[#allocation8 + $0x1e0] sm:$0xff]  ;;  %v904_v35 = vld [vmem:[#allocation8 + $0x1d8] sm:$0xff] }
  0x5b   :  { %1589 = vmatpush3.msra.mxu1 %v980_v59  ;;  %1555 = vmatprep.subr.mxu0 %v963_v62  ;;  %v890_v29 = vld [vmem:[#allocation8 + $0x168] sm:$0xff]  ;;  %v857_v32 = vld [vmem:[#allocation8 + $0x60] sm:$0xff]  ;;  %v856_v36 = vld [vmem:[#allocation8 + $0x58] sm:$0xff] }
  0x5c   :  { %1590 = vmatprep.subr.mxu1 %v995_v63  ;;  %1556 = vmatpush3.msra.mxu0 %v947_v2  ;;  %v889_v33 = vld [vmem:[#allocation8 + $0x160] sm:$0xff]  ;;  %v871_v37 = vld [vmem:[#allocation8 + $0xd0] sm:$0xff]  ;;  %v888_v38 = vld [vmem:[#allocation8 + $0x158] sm:$0xff] }
  0x5d   :  { %1591 = vmatpush3.msra.mxu1 %v979_v3  ;;  %1557 = vmatprep.subr.mxu0 %v962_v6  ;;  %v855_v39 = vld [vmem:[#allocation8 + $0x50] sm:$0xff]  ;;  %v870_v40 = vld [vmem:[#allocation8 + $0xc8] sm:$0xff]  ;;  %v869_v46 = vld [vmem:[#allocation8 + $0xc0] sm:$0xff] }
  0x5e   :  { %1592 = vmatprep.subr.mxu1 %v994_v7  ;;  %1558 = vmatpush3.msra.mxu0 %v946_v8  ;;  %v903_v41 = vld [vmem:[#allocation8 + $0x1d0] sm:$0xff]  ;;  %v854_v42 = vld [vmem:[#allocation8 + $0x48] sm:$0xff]  ;;  %v901_v47 = vld [vmem:[#allocation8 + $0x1c0] sm:$0xff] }
  0x5f   :  { %1593 = vmatpush3.msra.mxu1 %v978_v9  ;;  %1559 = vmatprep.subr.mxu0 %v961_v10  ;;  %v887_v43 = vld [vmem:[#allocation8 + $0x150] sm:$0xff]  ;;  %v902_v44 = vld [vmem:[#allocation8 + $0x1c8] sm:$0xff]  ;;  %v1975_v48 = vld [vmem:[#allocation3] sm:$0xff] }
  0x60   :  { %1594 = vmatprep.subr.mxu1 %v993_v11  ;;  %1560 = vmatpush3.msra.mxu0 %v945_v13  ;;  %v886_v45 = vld [vmem:[#allocation8 + $0x148] sm:$0xff]  ;;  %v1977_v49 = vld [vmem:[#allocation3 + $0x30] sm:$0xff]  ;;  %v1979_v50 = vld [vmem:[#allocation3 + $0x60] sm:$0xff]  ;;  %v179_v53 = vunpack.c.h.bf16 %v1975_v48  ;;  %v178_v55 = vunpack.c.l.bf16 %v1975_v48 }
  0x61   :  { %1117 = vmatprep.mubr.f32.mxu0 %v1046_v12  ;;  %1595 = vmatpush3.msra.mxu1 %v977_v15  ;;  %v1981_v51 = vld [vmem:[#allocation3 + $0x90] sm:$0xff]  ;;  %v1983_v52 = vld [vmem:[#allocation3 + $0xc0] sm:$0xff]  ;;  %v191_v54 = vunpack.c.h.bf16 %v1977_v49  ;;  %v190_v56 = vunpack.c.l.bf16 %v1977_v49  ;;  %v203_v60 = vunpack.c.h.bf16 %v1979_v50  ;;  %v202_v63 = vunpack.c.l.bf16 %v1979_v50  ;;  %v868_v6 = vld [vmem:[#allocation8 + $0xb8] sm:$0xff] }
  0x62   :  { %1187 = vmatprep.mubr.f32.mxu1 %v1048_v14  ;;  %1118 = vmatmul.mubr.f32.vlgmr.msra.gmra.mxu0 %v1045_v16  ;;  %v1989_v57 = vld [vmem:[#allocation3 + $0xf0] sm:$0xff]  ;;  %v1991_v58 = vld [vmem:[#allocation3 + $0x120] sm:$0xff]  ;;  %v215_v61 = vunpack.c.h.bf16 %v1981_v51  ;;  %v227_v62 = vunpack.c.h.bf16 %v1983_v52  ;;  %v393_v5 = vrot.slane %v179_v53, 4  ;;  %v900_v7 = vld [vmem:[#allocation8 + $0x1b8] sm:$0xff] }
  0x63   :  { %1188 = vmatmul.mubr.f32.vlgmr.msra.gmra.mxu1 %v1047_v17  ;;  %1599 = vmatprep.subr.mxu0 %v876_v18  ;;  %v1993_v59 = vld [vmem:[#allocation3 + $0x150] sm:$0xff]  ;;  %v853_v0 = vld [vmem:[#allocation8 + $0x40] sm:$0xff]  ;;  %v239_v2 = vunpack.c.h.bf16 %v1989_v57  ;;  %v251_v3 = vunpack.c.h.bf16 %v1991_v58  ;;  %v435_v8 = vrot.slane %v191_v54, 4  ;;  %v477_v9 = vrot.slane %v203_v60, 4  ;;  %v852_v12 = vld [vmem:[#allocation8 + $0x38] sm:$0xff] }
  0x64   :  { %1634 = vmatprep.subr.mxu1 %v908_v19  ;;  %1600 = vmatpush3.msra.mxu0 %v860_v20  ;;  %v885_v1 = vld [vmem:[#allocation8 + $0x140] sm:$0xff]  ;;  %v263_v4 = vunpack.c.h.bf16 %v1993_v59  ;;  %v519_v10 = vrot.slane %v215_v61, 4  ;;  %v561_v11 = vrot.slane %v227_v62, 4  ;;  %v884_v13 = vld [vmem:[#allocation8 + $0x138] sm:$0xff]  ;;  %v394_v14 = vadd.f32 %v393_v5, %v179_v53  ;;  %v867_v18 = vld [vmem:[#allocation8 + $0xb0] sm:$0xff] }
  0x65   :  { %1635 = vmatpush3.msra.mxu1 %v892_v21  ;;  %1601 = vmatprep.subr.mxu0 %v875_v22  ;;  %v603_v15 = vrot.slane %v239_v2, 4  ;;  %v645_v16 = vrot.slane %v251_v3, 4  ;;  %v899_v19 = vld [vmem:[#allocation8 + $0x1b0] sm:$0xff]  ;;  %v436_v20 = vadd.f32 %v435_v8, %v191_v54  ;;  %v478_v21 = vadd.f32 %v477_v9, %v203_v60  ;;  %v849_v53 = vld [vmem:[#allocation8 + $0x20] sm:$0xff]  ;;  %v880_v8 = vld [vmem:[#allocation8 + $0x118] sm:$0xff] }
  0x66   :  { %1636 = vmatprep.subr.mxu1 %v907_v23  ;;  %1602 = vmatpush3.msra.mxu0 %v859_v24  ;;  %v687_v17 = vrot.slane %v263_v4, 4  ;;  %v520_v22 = vadd.f32 %v519_v10, %v215_v61  ;;  %v214_v23 = vunpack.c.l.bf16 %v1981_v51  ;;  %v851_v24 = vld [vmem:[#allocation8 + $0x30] sm:$0xff]  ;;  %v881_v54 = vld [vmem:[#allocation8 + $0x120] sm:$0xff] }
  0x67   :  { %1637 = vmatpush3.msra.mxu1 %v891_v25  ;;  %1603 = vmatprep.subr.mxu0 %v874_v26  ;;  %v883_v25 = vld [vmem:[#allocation8 + $0x130] sm:$0xff]  ;;  %v395_v26 = vrot.slane %v394_v14, 2 }
  0x68   :  { %1638 = vmatprep.subr.mxu1 %v906_v27  ;;  %1604 = vmatpush3.msra.mxu0 %v858_v28  ;;  %v562_v27 = vadd.f32 %v561_v11, %v227_v62  ;;  %v604_v28 = vadd.f32 %v603_v15, %v239_v2  ;;  %v896_v2 = vld [vmem:[#allocation8 + $0x198] sm:$0xff] }
  0x69   :  { %1639 = vmatpush3.msra.mxu1 %v890_v29  ;;  %1605 = vmatprep.subr.mxu0 %v873_v30  ;;  %v646_v29 = vadd.f32 %v645_v16, %v251_v3  ;;  %v866_v30 = vld [vmem:[#allocation8 + $0xa8] sm:$0xff] }
  0x6a   :  { %1640 = vmatprep.subr.mxu1 %v905_v31  ;;  %1606 = vmatpush3.msra.mxu0 %v857_v32  ;;  %v898_v31 = vld [vmem:[#allocation8 + $0x1a8] sm:$0xff]  ;;  %v437_v32 = vrot.slane %v436_v20, 2 }
  0x6b   :  { %1641 = vmatpush3.msra.mxu1 %v889_v33  ;;  %1607 = vmatprep.subr.mxu0 %v872_v34  ;;  %v479_v33 = vrot.slane %v478_v21, 2  ;;  %v521_v34 = vrot.slane %v520_v22, 2 }
  0x6c   :  { %1642 = vmatprep.subr.mxu1 %v904_v35  ;;  %1608 = vmatpush3.msra.mxu0 %v856_v36  ;;  %v688_v35 = vadd.f32 %v687_v17, %v263_v4  ;;  %v850_v36 = vld [vmem:[#allocation8 + $0x28] sm:$0xff] }
  0x6d   :  { %1643 = vmatpush3.msra.mxu1 %v888_v38  ;;  %1609 = vmatprep.subr.mxu0 %v871_v37  ;;  %v882_v37 = vld [vmem:[#allocation8 + $0x128] sm:$0xff]  ;;  %v396_v38 = vadd.f32 %v395_v26, %v394_v14  ;;  %v895_v14 = vld [vmem:[#allocation8 + $0x190] sm:$0xff] }
  0x6e   :  { %1644 = vmatprep.subr.mxu1 %v903_v41  ;;  %1610 = vmatpush3.msra.mxu0 %v855_v39  ;;  %v563_v39 = vrot.slane %v562_v27, 2  ;;  %v647_v41 = vrot.slane %v646_v29, 2  ;;  %v862_v26 = vld [vmem:[#allocation8 + $0x88] sm:$0xff] }
  0x6f   :  { %1645 = vmatpush3.msra.mxu1 %v887_v43  ;;  %1611 = vmatprep.subr.mxu0 %v870_v40  ;;  %v605_v40 = vrot.slane %v604_v28, 2  ;;  %v897_v43 = vld [vmem:[#allocation8 + $0x1a0] sm:$0xff]  ;;  %v397_v60 = vrot.slane %v396_v38, 1 }
  0x70   :  { %1646 = vmatprep.subr.mxu1 %v902_v44  ;;  %1612 = vmatpush3.msra.mxu0 %v854_v42  ;;  %v865_v42 = vld [vmem:[#allocation8 + $0xa0] sm:$0xff]  ;;  %v438_v44 = vadd.f32 %v437_v32, %v436_v20  ;;  %v564_v61 = vadd.f32 %v563_v39, %v562_v27  ;;  %v879_v20 = vld [vmem:[#allocation8 + $0x110] sm:$0xff]  ;;  %v894_v27 = vld [vmem:[#allocation8 + $0x188] sm:$0xff] }
  0x71   :  { %1647 = vmatpush3.msra.mxu1 %v886_v45  ;;  %1613 = vmatprep.subr.mxu0 %v869_v46  ;;  %v480_v45 = vadd.f32 %v479_v33, %v478_v21  ;;  %v522_v46 = vadd.f32 %v521_v34, %v520_v22  ;;  %v606_v62 = vadd.f32 %v605_v40, %v604_v28  ;;  %v846_v32 = vld [vmem:[#allocation8 + $0x8] sm:$0xff]  ;;  %v893_v40 = vld [vmem:[#allocation8 + $0x180] sm:$0xff] }
  0x72   :  { %1648 = vmatprep.subr.mxu1 %v901_v47  ;;  %1614 = vmatpush3.msra.mxu0 %v853_v0  ;;  %v689_v47 = vrot.slane %v688_v35, 2  ;;  %v648_v0 = vadd.f32 %v647_v41, %v646_v29  ;;  %v439_v3 = vrot.slane %v438_v44, 1  ;;  %v398_v9 = vadd.f32 %v397_v60, %v396_v38  ;;  %v878_v34 = vld [vmem:[#allocation8 + $0x108] sm:$0xff]  ;;  %v940_v60 = vld [vmem:[#allocation8 + $0x2f8] sm:$0xff] }
  0x73   :  { %1649 = vmatpush3.msra.mxu1 %v885_v1  ;;  %1615 = vmatprep.subr.mxu0 %v868_v6  ;;  %v864_v1 = vld [vmem:[#allocation8 + $0x98] sm:$0xff]  ;;  %v481_v4 = vrot.slane %v480_v45, 1  ;;  %v523_v5 = vrot.slane %v522_v46, 1  ;;  %v565_v10 = vrot.slane %v564_v61, 1  ;;  %v607_v11 = vrot.slane %v606_v62, 1 }
  0x74   :  { %1650 = vmatprep.subr.mxu1 %v900_v7  ;;  %1616 = vmatpush3.msra.mxu0 %v852_v12  ;;  %v690_v6 = vadd.f32 %v689_v47, %v688_v35  ;;  %v848_v7 = vld [vmem:[#allocation8 + $0x18] sm:$0xff]  ;;  %v649_v12 = vrot.slane %v648_v0, 1  ;;  %v440_v15 = vadd.f32 %v439_v3, %v438_v44  ;;  %v262_v35 = vunpack.c.l.bf16 %v1993_v59  ;;  %v845_v59 = vld [vmem:[#allocation8] sm:$0xff] }
  0x75   :  { %1651 = vmatpush3.msra.mxu1 %v884_v13  ;;  %1617 = vmatprep.subr.mxu0 %v867_v18  ;;  %v863_v13 = vld [vmem:[#allocation8 + $0x90] sm:$0xff]  ;;  %v482_v16 = vadd.f32 %v481_v4, %v480_v45  ;;  %v524_v17 = vadd.f32 %v523_v5, %v522_v46  ;;  %v566_v21 = vadd.f32 %v565_v10, %v564_v61  ;;  %v512_v38 = vrot.slane %v214_v23, 4  ;;  %v877_v45 = vld [vmem:[#allocation8 + $0x100] sm:$0xff] }
  0x76   :  { %1652 = vmatprep.subr.mxu1 %v899_v19  ;;  %1618 = vmatpush3.msra.mxu0 %v851_v24  ;;  %v691_v18 = vrot.slane %v690_v6, 1  ;;  %v847_v19 = vld [vmem:[#allocation8 + $0x10] sm:$0xff]  ;;  %v608_v22 = vadd.f32 %v607_v11, %v606_v62  ;;  %v650_v24 = vadd.f32 %v649_v12, %v648_v0  ;;  %v783_v29 = vsel %vm769_vm0, %v440_v15, %v398_v9 }
  0x77   :  { %1653 = vmatpush3.msra.mxu1 %v883_v25  ;;  %1619 = vmatprep.subr.mxu0 %v866_v30  ;;  %v226_v25 = vunpack.c.l.bf16 %v1983_v52  ;;  %v238_v30 = vunpack.c.l.bf16 %v1989_v57  ;;  %v784_v33 = vsel %vm771_vm1, %v482_v16, %v783_v29  ;;  %v386_v52 = vrot.slane %v178_v55, 4 }
  0x78   :  { %1654 = vmatprep.subr.mxu1 %v898_v31  ;;  %1620 = vmatpush3.msra.mxu0 %v850_v36  ;;  %v692_v28 = vadd.f32 %v691_v18, %v690_v6  ;;  %v250_v31 = vunpack.c.l.bf16 %v1991_v58  ;;  %v428_v36 = vrot.slane %v190_v56, 4  ;;  %v785_v57 = vsel %vm773_vm2, %v524_v17, %v784_v33 }
  0x79   :  { %1655 = vmatpush3.msra.mxu1 %v882_v37  ;;  %1621 = vmatprep.subr.mxu0 %v865_v42  ;;  %v861_v37 = vld [vmem:[#allocation8 + $0x80] sm:$0xff]  ;;  %v470_v58 = vrot.slane %v202_v63, 4  ;;  %v554_v39 = vrot.slane %v226_v25, 4  ;;  %v786_v41 = vsel %vm775_vm3, %v566_v21, %v785_v57  ;;  %v387_v42 = vadd.f32 %v386_v52, %v178_v55  ;;  %v2045_v52 = vld [vmem:[#allocation3 + $0x128] sm:$0xff] }
  0x7a   :  { %1656 = vmatprep.subr.mxu1 %v897_v43  ;;  %1622 = vmatpush3.msra.mxu0 %v849_v53  ;;  %v429_v43 = vadd.f32 %v428_v36, %v190_v56  ;;  %v596_v44 = vrot.slane %v238_v30, 4  ;;  %v787_v46 = vsel %vm777_vm4, %v608_v22, %v786_v41  ;;  %v513_v53 = vadd.f32 %v512_v38, %v214_v23  ;;  %v2047_v36 = vld [vmem:[#allocation3 + $0x158] sm:$0xff] }
  0x7b   :  { %1657 = vmatpush3.msra.mxu1 %v881_v54  ;;  %1623 = vmatprep.subr.mxu0 %v864_v1  ;;  %v471_v47 = vadd.f32 %v470_v58, %v202_v63  ;;  %v638_v54 = vrot.slane %v250_v31, 4  ;;  %v788_v48 = vsel %vm779_vm5, %v650_v24, %v787_v46  ;;  %v388_v55 = vrot.slane %v387_v42, 2 }
  0x7c   :  { %1658 = vmatprep.subr.mxu1 %v896_v2  ;;  %1624 = vmatpush3.msra.mxu0 %v848_v7  ;;  %v430_v49 = vrot.slane %v429_v43, 2  ;;  %v555_v56 = vadd.f32 %v554_v39, %v226_v25  ;;  %v789_v61 = vsel %vm781_vm6, %v692_v28, %v788_v48  ;;  %v514_v0 = vrot.slane %v513_v53, 2  ;;  %v2034_v25 = vld [vmem:[#allocation3 + $0x68] sm:$0xff] }
  0x7d   :  { %1659 = vmatpush3.msra.mxu1 %v880_v8  ;;  %1625 = vmatprep.subr.mxu0 %v863_v13  ;;  %v472_v62 = vrot.slane %v471_v47, 2  ;;  %v597_v1 = vadd.f32 %v596_v44, %v238_v30  ;;  %v389_v50 = vadd.f32 %v388_v55, %v387_v42  ;;  %v639_v23 = vadd.f32 %v638_v54, %v250_v31  ;;  %v2039_v30 = vld [vmem:[#allocation3 + $0xc8] sm:$0xff]  ;;  %v2041_v31 = vld [vmem:[#allocation3 + $0xf8] sm:$0xff] }
  0x7e   :  { %1660 = vmatprep.subr.mxu1 %v895_v14  ;;  %1626 = vmatpush3.msra.mxu0 %v847_v19  ;;  %v431_v51 = vadd.f32 %v430_v49, %v429_v43  ;;  %v556_v63 = vrot.slane %v555_v56, 2  ;;  %v515_v3 = vadd.f32 %v514_v0, %v513_v53  ;;  %v680_v5 = vrot.slane %v262_v35, 4  ;;  %v2030_v14 = vld [vmem:[#allocation3 + $0x8] sm:$0xff]  ;;  %v2032_v19 = vld [vmem:[#allocation3 + $0x38] sm:$0xff] }
  0x7f   :  { %1661 = vmatpush3.msra.mxu1 %v879_v20  ;;  %1627 = vmatprep.subr.mxu0 %v862_v26  ;;  %v473_v2 = vadd.f32 %v472_v62, %v471_v47  ;;  %v598_v4 = vrot.slane %v597_v1, 2  ;;  %v390_v6 = vrot.slane %v389_v50, 1  ;;  %v640_v9 = vrot.slane %v639_v23, 2  ;;  %v2036_v26 = vld [vmem:[#allocation3 + $0x98] sm:$0xff] }
  0x80   :  { %1662 = vmatprep.subr.mxu1 %v894_v27  ;;  %1628 = vmatpush3.msra.mxu0 %v846_v32  ;;  %v432_v7 = vrot.slane %v431_v51, 1  ;;  %v557_v8 = vadd.f32 %v556_v63, %v555_v56  ;;  %v516_v11 = vrot.slane %v515_v3, 1  ;;  %v681_v13 = vadd.f32 %v680_v5, %v262_v35 }
  0x81   :  { %1663 = vmatpush3.msra.mxu1 %v878_v34  ;;  %1629 = vmatprep.subr.mxu0 %v861_v37  ;;  %v474_v10 = vrot.slane %v473_v2, 1  ;;  %v599_v12 = vadd.f32 %v598_v4, %v597_v1  ;;  %v391_v15 = vadd.f32 %v390_v6, %v389_v50  ;;  %v641_v18 = vadd.f32 %v640_v9, %v639_v23  ;;  %v923_v4 = vld [vmem:[#allocation8 + $0x270] sm:$0xff]  ;;  %v938_v9 = vld [vmem:[#allocation8 + $0x2e8] sm:$0xff] }
  0x82   :  { %1664 = vmatprep.subr.mxu1 %v893_v40  ;;  %1630 = vmatpush3.msra.mxu0 %v845_v59  ;;  %v433_v16 = vadd.f32 %v432_v7, %v431_v51  ;;  %v558_v17 = vrot.slane %v557_v8, 1  ;;  %v517_v21 = vadd.f32 %v516_v11, %v515_v3  ;;  %v682_v24 = vrot.slane %v681_v13, 2  ;;  %v939_v51 = vld [vmem:[#allocation8 + $0x2f0] sm:$0xff] }
  0x83   :  { %1665 = vmatpush3.msra.mxu1 %v877_v45  ;;  %1257 = vmatprep.mubr.f32.mxu0 %v789_v61  ;;  %v475_v20 = vadd.f32 %v474_v10, %v473_v2  ;;  %v600_v22 = vrot.slane %v599_v12, 1  ;;  %v642_v28 = vrot.slane %v641_v18, 1  ;;  %v181_v32 = vunpack.c.h.bf16 %v2030_v14  ;;  %v924_v61 = vld [vmem:[#allocation8 + $0x278] sm:$0xff] }
  0x84   :  { %1669 = vmatprep.subr.mxu0 %v940_v60  ;;  %v559_v27 = vadd.f32 %v558_v17, %v557_v8  ;;  %v770_v29 = vsel %vm769_vm0, %v433_v16, %v391_v15  ;;  %v683_v34 = vadd.f32 %v682_v24, %v681_v13  ;;  %v193_v37 = vunpack.c.h.bf16 %v2032_v19  ;;  %v922_v15 = vld [vmem:[#allocation8 + $0x268] sm:$0xff] }
  0x85   :  { %v601_v33 = vadd.f32 %v600_v22, %v599_v12  ;;  %v772_v35 = vsel %vm771_vm1, %v475_v20, %v770_v29  ;;  %v643_v57 = vadd.f32 %v642_v28, %v641_v18  ;;  %v205_v38 = vunpack.c.h.bf16 %v2034_v25  ;;  %v921_v29 = vld [vmem:[#allocation8 + $0x260] sm:$0xff] }
  0x86   :  { %v774_v58 = vsel %vm773_vm2, %v517_v21, %v772_v35  ;;  %v217_v39 = vunpack.c.h.bf16 %v2036_v26  ;;  %v684_v40 = vrot.slane %v683_v34, 1  ;;  %v229_v41 = vunpack.c.h.bf16 %v2039_v30  ;;  %v937_v21 = vld [vmem:[#allocation8 + $0x2e0] sm:$0xff] }
  0x87   :  { %v776_v59 = vsel %vm775_vm3, %v559_v27, %v774_v58  ;;  %v241_v42 = vunpack.c.h.bf16 %v2041_v31  ;;  %v253_v44 = vunpack.c.h.bf16 %v2045_v52  ;;  %v265_v45 = vunpack.c.h.bf16 %v2047_v36 }
  0x88   :  { %v778_v43 = vsel %vm777_vm4, %v601_v33, %v776_v59  ;;  %v407_v46 = vrot.slane %v181_v32, 4  ;;  %v685_v47 = vadd.f32 %v684_v40, %v683_v34  ;;  %v449_v54 = vrot.slane %v193_v37, 4  ;;  %v920_v40 = vld [vmem:[#allocation8 + $0x258] sm:$0xff] }
  0x89   :  { %v780_v53 = vsel %vm779_vm5, %v643_v57, %v778_v43  ;;  %v491_v60 = vrot.slane %v205_v38, 4  ;;  %v533_v55 = vrot.slane %v217_v39, 4  ;;  %v575_v49 = vrot.slane %v229_v41, 4 }
  0x8a   :  { %v408_v48 = vadd.f32 %v407_v46, %v181_v32  ;;  %v617_v56 = vrot.slane %v241_v42, 4  ;;  %v782_v62 = vsel %vm781_vm6, %v685_v47, %v780_v53  ;;  %v450_v0 = vadd.f32 %v449_v54, %v193_v37  ;;  %v936_v37 = vld [vmem:[#allocation8 + $0x2d8] sm:$0xff]  ;;  %v919_v54 = vld [vmem:[#allocation8 + $0x250] sm:$0xff] }
  0x8b   :  { %v492_v1 = vadd.f32 %v491_v60, %v205_v38  ;;  %v659_v50 = vrot.slane %v253_v44, 4  ;;  %1258 = vmatmul.mubr.f32.vlgmr.msra.gmra.mxu0 %v782_v62  ;;  %v534_v23 = vadd.f32 %v533_v55, %v217_v39  ;;  %v576_v2 = vadd.f32 %v575_v49, %v229_v41 }
  0x8c   :  { %v409_v63 = vrot.slane %v408_v48, 2  ;;  %v618_v3 = vadd.f32 %v617_v56, %v241_v42  ;;  %v451_v5 = vrot.slane %v450_v0, 2  ;;  %v701_v8 = vrot.slane %v265_v45, 4  ;;  %1670 = vmatpush3.msra.mxu0 %v924_v61  ;;  %v934_v56 = vld [vmem:[#allocation8 + $0x2c8] sm:$0xff] }
  0x8d   :  { %v493_v6 = vrot.slane %v492_v1, 2  ;;  %v660_v7 = vadd.f32 %v659_v50, %v253_v44  ;;  %v535_v11 = vrot.slane %v534_v23, 2  ;;  %v577_v12 = vrot.slane %v576_v2, 2  ;;  %1671 = vmatprep.subr.mxu0 %v939_v51  ;;  %v935_v44 = vld [vmem:[#allocation8 + $0x2d0] sm:$0xff] }
  0x8e   :  { %v410_v10 = vadd.f32 %v409_v63, %v408_v48  ;;  %v619_v13 = vrot.slane %v618_v3, 2  ;;  %v452_v16 = vadd.f32 %v451_v5, %v450_v0  ;;  %v702_v20 = vadd.f32 %v701_v8, %v265_v45  ;;  %1672 = vmatpush3.msra.mxu0 %v923_v4  ;;  %v932_v8 = vld [vmem:[#allocation8 + $0x2b8] sm:$0xff] }
  0x8f   :  { %v494_v17 = vadd.f32 %v493_v6, %v492_v1  ;;  %v661_v18 = vrot.slane %v660_v7, 2  ;;  %v536_v24 = vadd.f32 %v535_v11, %v534_v23  ;;  %v578_v27 = vadd.f32 %v577_v12, %v576_v2  ;;  %1673 = vmatprep.subr.mxu0 %v938_v9  ;;  %v916_v11 = vld [vmem:[#allocation8 + $0x238] sm:$0xff] }
  0x90   :  { %v411_v22 = vrot.slane %v410_v10, 1  ;;  %v620_v28 = vadd.f32 %v619_v13, %v618_v3  ;;  %v453_v32 = vrot.slane %v452_v16, 1  ;;  %v703_v35 = vrot.slane %v702_v20, 2  ;;  %1674 = vmatpush3.msra.mxu0 %v922_v15 }
  0x91   :  { %v495_v33 = vrot.slane %v494_v17, 1  ;;  %v662_v34 = vadd.f32 %v661_v18, %v660_v7  ;;  %v537_v58 = vrot.slane %v536_v24, 1  ;;  %v579_v38 = vrot.slane %v578_v27, 1  ;;  %1675 = vmatprep.subr.mxu0 %v937_v21 }
  0x92   :  { %v412_v57 = vadd.f32 %v411_v22, %v410_v10  ;;  %v621_v39 = vrot.slane %v620_v28, 1  ;;  %v454_v59 = vadd.f32 %v453_v32, %v452_v16  ;;  %v704_v43 = vadd.f32 %v703_v35, %v702_v20  ;;  %1676 = vmatpush3.msra.mxu0 %v921_v29  ;;  %v931_v16 = vld [vmem:[#allocation8 + $0x2b0] sm:$0xff]  ;;  %v930_v32 = vld [vmem:[#allocation8 + $0x2a8] sm:$0xff] }
  0x93   :  { %v496_v41 = vadd.f32 %v495_v33, %v494_v17  ;;  %v663_v42 = vrot.slane %v662_v34, 1  ;;  %v538_v45 = vadd.f32 %v537_v58, %v536_v24  ;;  %v580_v46 = vadd.f32 %v579_v38, %v578_v27  ;;  %1677 = vmatprep.subr.mxu0 %v936_v37  ;;  %v915_v22 = vld [vmem:[#allocation8 + $0x230] sm:$0xff] }
  0x94   :  { %v622_v47 = vadd.f32 %v621_v39, %v620_v28  ;;  %v180_v53 = vunpack.c.l.bf16 %v2030_v14  ;;  %v705_v48 = vrot.slane %v704_v43, 1  ;;  %v797_v55 = vsel %vm769_vm0, %v454_v59, %v412_v57  ;;  %1678 = vmatpush3.msra.mxu0 %v920_v40  ;;  %v918_v14 = vld [vmem:[#allocation8 + $0x248] sm:$0xff]  ;;  %v929_v59 = vld [vmem:[#allocation8 + $0x2a0] sm:$0xff] }
  0x95   :  { %v664_v60 = vadd.f32 %v663_v42, %v662_v34  ;;  %v192_v49 = vunpack.c.l.bf16 %v2032_v19  ;;  %v798_v61 = vsel %vm771_vm1, %v496_v41, %v797_v55  ;;  %v204_v62 = vunpack.c.l.bf16 %v2034_v25  ;;  %1679 = vmatprep.subr.mxu0 %v935_v44  ;;  %v933_v19 = vld [vmem:[#allocation8 + $0x2c0] sm:$0xff]  ;;  %v914_v57 = vld [vmem:[#allocation8 + $0x228] sm:$0xff] }
  0x96   :  { %v216_v0 = vunpack.c.l.bf16 %v2036_v26  ;;  %v228_v1 = vunpack.c.l.bf16 %v2039_v30  ;;  %v706_v50 = vadd.f32 %v705_v48, %v704_v43  ;;  %v799_v51 = vsel %vm773_vm2, %v538_v45, %v798_v61  ;;  %1680 = vmatpush3.msra.mxu0 %v919_v54  ;;  %v917_v26 = vld [vmem:[#allocation8 + $0x240] sm:$0xff]  ;;  %v2076_v48 = vld [vmem:[#allocation3 + $0x10] sm:$0xff] }
  0x97   :  { %v240_v63 = vunpack.c.l.bf16 %v2041_v31  ;;  %v252_v23 = vunpack.c.l.bf16 %v2045_v52  ;;  %v800_v2 = vsel %vm775_vm3, %v580_v46, %v799_v51  ;;  %v264_v3 = vunpack.c.l.bf16 %v2047_v36  ;;  %1681 = vmatprep.subr.mxu0 %v934_v56  ;;  %v913_v45 = vld [vmem:[#allocation8 + $0x220] sm:$0xff] }
  0x98   :  { %v400_v25 = vrot.slane %v180_v53, 4  ;;  %v442_v4 = vrot.slane %v192_v49, 4  ;;  %v801_v30 = vsel %vm777_vm4, %v622_v47, %v800_v2  ;;  %v484_v5 = vrot.slane %v204_v62, 4  ;;  %1682 = vmatpush3.msra.mxu0 %v918_v14  ;;  %v2084_v2 = vld [vmem:[#allocation3 + $0xd0] sm:$0xff] }
  0x99   :  { %v526_v6 = vrot.slane %v216_v0, 4  ;;  %v568_v7 = vrot.slane %v228_v1, 4  ;;  %v802_v31 = vsel %vm779_vm5, %v664_v60, %v801_v30  ;;  %v610_v10 = vrot.slane %v240_v63, 4  ;;  %1683 = vmatprep.subr.mxu0 %v933_v19  ;;  %v928_v60 = vld [vmem:[#allocation8 + $0x298] sm:$0xff]  ;;  %v2082_v19 = vld [vmem:[#allocation3 + $0xa0] sm:$0xff] }
  0x9a   :  { %v401_v52 = vadd.f32 %v400_v25, %v180_v53  ;;  %v443_v9 = vadd.f32 %v442_v4, %v192_v49  ;;  %v803_v36 = vsel %vm781_vm6, %v706_v50, %v802_v31  ;;  %v485_v12 = vadd.f32 %v484_v5, %v204_v62  ;;  %1684 = vmatpush3.msra.mxu0 %v917_v26  ;;  %v912_v62 = vld [vmem:[#allocation8 + $0x218] sm:$0xff]  ;;  %v911_v26 = vld [vmem:[#allocation8 + $0x210] sm:$0xff]  ;;  %v2087_v30 = vld [vmem:[#allocation3 + $0x100] sm:$0xff] }
  0x9b   :  { %v527_v13 = vadd.f32 %v526_v6, %v216_v0  ;;  %v569_v15 = vadd.f32 %v568_v7, %v228_v1  ;;  %1327 = vmatprep.mubr.f32.mxu1 %v803_v36  ;;  %v611_v20 = vadd.f32 %v610_v10, %v240_v63  ;;  %v652_v21 = vrot.slane %v252_v23, 4  ;;  %1685 = vmatprep.subr.mxu0 %v932_v8  ;;  %v2078_v0 = vld [vmem:[#allocation3 + $0x40] sm:$0xff]  ;;  %v2080_v1 = vld [vmem:[#allocation3 + $0x70] sm:$0xff]  ;;  %v926_v31 = vld [vmem:[#allocation8 + $0x288] sm:$0xff] }
  0x9c   :  { %v402_v17 = vrot.slane %v401_v52, 2  ;;  %v444_v18 = vrot.slane %v443_v9, 2  ;;  %v486_v24 = vrot.slane %v485_v12, 2  ;;  %v694_v29 = vrot.slane %v264_v3, 4  ;;  %1686 = vmatpush3.msra.mxu0 %v916_v11  ;;  %v2089_v5 = vld [vmem:[#allocation3 + $0x130] sm:$0xff] }
  0x9d   :  { %v528_v27 = vrot.slane %v527_v13, 2  ;;  %v570_v28 = vrot.slane %v569_v15, 2  ;;  %v612_v35 = vrot.slane %v611_v20, 2  ;;  %v653_v37 = vadd.f32 %v652_v21, %v252_v23  ;;  %1687 = vmatprep.subr.mxu0 %v931_v16  ;;  %v927_v23 = vld [vmem:[#allocation8 + $0x290] sm:$0xff] }
  0x9e   :  { %v403_v33 = vadd.f32 %v402_v17, %v401_v52  ;;  %v445_v34 = vadd.f32 %v444_v18, %v443_v9  ;;  %v487_v58 = vadd.f32 %v486_v24, %v485_v12  ;;  %v695_v40 = vadd.f32 %v694_v29, %v264_v3  ;;  %1688 = vmatpush3.msra.mxu0 %v915_v22  ;;  %v2093_v52 = vld [vmem:[#allocation3 + $0x160] sm:$0xff]  ;;  %v910_v12 = vld [vmem:[#allocation8 + $0x208] sm:$0xff] }
  0x9f   :  { %v529_v38 = vadd.f32 %v528_v27, %v527_v13  ;;  %v571_v39 = vadd.f32 %v570_v28, %v569_v15  ;;  %v613_v43 = vadd.f32 %v612_v35, %v611_v20  ;;  %v654_v44 = vrot.slane %v653_v37, 2  ;;  %1689 = vmatprep.subr.mxu0 %v930_v32  ;;  %v925_v18 = vld [vmem:[#allocation8 + $0x280] sm:$0xff] }
  0xa0   :  { %v404_v41 = vrot.slane %v403_v33, 1  ;;  %v446_v42 = vrot.slane %v445_v34, 1  ;;  %v488_v46 = vrot.slane %v487_v58, 1  ;;  %v696_v54 = vrot.slane %v695_v40, 2  ;;  %1690 = vmatpush3.msra.mxu0 %v914_v57  ;;  %v909_v24 = vld [vmem:[#allocation8 + $0x200] sm:$0xff] }
  0xa1   :  { %v530_v47 = vrot.slane %v529_v38, 1  ;;  %v572_v53 = vrot.slane %v571_v39, 1  ;;  %v614_v56 = vrot.slane %v613_v43, 1  ;;  %v655_v61 = vadd.f32 %v654_v44, %v653_v37  ;;  %1691 = vmatprep.subr.mxu0 %v929_v59 }
  0xa2   :  { %v405_v55 = vadd.f32 %v404_v41, %v403_v33  ;;  %v447_v49 = vadd.f32 %v446_v42, %v445_v34  ;;  %v489_v14 = vadd.f32 %v488_v46, %v487_v58  ;;  %v697_v63 = vadd.f32 %v696_v54, %v695_v40  ;;  %1692 = vmatpush3.msra.mxu0 %v913_v45 }
  0xa3   :  { %v531_v50 = vadd.f32 %v530_v47, %v529_v38  ;;  %v573_v51 = vadd.f32 %v572_v53, %v571_v39  ;;  %v615_v3 = vadd.f32 %v614_v56, %v613_v43  ;;  %v656_v25 = vrot.slane %v655_v61, 1  ;;  %1693 = vmatprep.subr.mxu0 %v928_v60 }
  0xa4   :  { %v790_v4 = vsel %vm769_vm0, %v447_v49, %v405_v55  ;;  %v183_v6 = vunpack.c.h.bf16 %v2076_v48  ;;  %v698_v7 = vrot.slane %v697_v63, 1  ;;  %1694 = vmatpush3.msra.mxu0 %v912_v62  ;;  %v195_v9 = vunpack.c.h.bf16 %v2078_v0 }
  0xa5   :  { %v791_v8 = vsel %vm771_vm1, %v489_v14, %v790_v4  ;;  %v207_v10 = vunpack.c.h.bf16 %v2080_v1  ;;  %v657_v11 = vadd.f32 %v656_v25, %v655_v61  ;;  %1695 = vmatprep.subr.mxu0 %v927_v23  ;;  %v219_v13 = vunpack.c.h.bf16 %v2082_v19 }
  0xa6   :  { %v792_v36 = vsel %vm773_vm2, %v531_v50, %v791_v8  ;;  %v231_v15 = vunpack.c.h.bf16 %v2084_v2  ;;  %v699_v16 = vadd.f32 %v698_v7, %v697_v63  ;;  %1696 = vmatpush3.msra.mxu0 %v911_v26  ;;  %v243_v20 = vunpack.c.h.bf16 %v2087_v30 }
  0xa7   :  { %v793_v17 = vsel %vm775_vm3, %v573_v51, %v792_v36  ;;  %v255_v21 = vunpack.c.h.bf16 %v2089_v5  ;;  %1697 = vmatprep.subr.mxu0 %v926_v31  ;;  %v267_v27 = vunpack.c.h.bf16 %v2093_v52  ;;  %v421_v28 = vrot.slane %v183_v6, 4 }
  0xa8   :  { %v794_v22 = vsel %vm777_vm4, %v615_v3, %v793_v17  ;;  %v463_v29 = vrot.slane %v195_v9, 4  ;;  %1698 = vmatpush3.msra.mxu0 %v910_v12  ;;  %v505_v33 = vrot.slane %v207_v10, 4  ;;  %v547_v34 = vrot.slane %v219_v13, 4 }
  0xa9   :  { %v795_v32 = vsel %vm779_vm5, %v657_v11, %v794_v22  ;;  %v589_v35 = vrot.slane %v231_v15, 4  ;;  %1699 = vmatprep.subr.mxu0 %v925_v18  ;;  %v422_v57 = vadd.f32 %v421_v28, %v183_v6  ;;  %v631_v38 = vrot.slane %v243_v20, 4 }
  0xaa   :  { %v796_v37 = vsel %vm781_vm6, %v699_v16, %v795_v32  ;;  %v464_v58 = vadd.f32 %v463_v29, %v195_v9  ;;  %1700 = vmatpush3.msra.mxu0 %v909_v24  ;;  %v506_v39 = vadd.f32 %v505_v33, %v207_v10  ;;  %v548_v40 = vadd.f32 %v547_v34, %v219_v13 }
  0xab   :  { %1328 = vmatmul.mubr.f32.vlgmr.msra.gmra.mxu1 %v796_v37  ;;  %v590_v59 = vadd.f32 %v589_v35, %v231_v15  ;;  %v673_v41 = vrot.slane %v255_v21, 4  ;;  %v423_v42 = vrot.slane %v422_v57, 2  ;;  %v632_v44 = vadd.f32 %v631_v38, %v243_v20 }
  0xac   :  { %v465_v43 = vrot.slane %v464_v58, 2  ;;  %v715_v45 = vrot.slane %v267_v27, 4  ;;  %v507_v46 = vrot.slane %v506_v39, 2  ;;  %v549_v47 = vrot.slane %v548_v40, 2 }
  0xad   :  { %v591_v53 = vrot.slane %v590_v59, 2  ;;  %v674_v54 = vadd.f32 %v673_v41, %v255_v21  ;;  %v424_v60 = vadd.f32 %v423_v42, %v422_v57  ;;  %v633_v49 = vrot.slane %v632_v44, 2 }
  0xae   :  { %v466_v55 = vadd.f32 %v465_v43, %v464_v58  ;;  %v716_v56 = vadd.f32 %v715_v45, %v267_v27  ;;  %v508_v61 = vadd.f32 %v507_v46, %v506_v39  ;;  %v550_v62 = vadd.f32 %v549_v47, %v548_v40 }
  0xaf   :  { %v592_v14 = vadd.f32 %v591_v53, %v590_v59  ;;  %v675_v50 = vrot.slane %v674_v54, 2  ;;  %v425_v51 = vrot.slane %v424_v60, 1  ;;  %v634_v23 = vadd.f32 %v633_v49, %v632_v44 }
  0xb0   :  { %v467_v63 = vrot.slane %v466_v55, 1  ;;  %v717_v3 = vrot.slane %v716_v56, 2  ;;  %v509_v25 = vrot.slane %v508_v61, 1  ;;  %v551_v4 = vrot.slane %v550_v62, 1 }
  0xb1   :  { %v593_v26 = vrot.slane %v592_v14, 1  ;;  %v676_v6 = vadd.f32 %v675_v50, %v674_v54  ;;  %v426_v7 = vadd.f32 %v425_v51, %v424_v60  ;;  %v635_v31 = vrot.slane %v634_v23, 1 }
  0xb2   :  { %v468_v8 = vadd.f32 %v467_v63, %v466_v55  ;;  %v718_v9 = vadd.f32 %v717_v3, %v716_v56  ;;  %v510_v10 = vadd.f32 %v509_v25, %v508_v61  ;;  %v552_v11 = vadd.f32 %v551_v4, %v550_v62 }
  0xb3   :  { %v594_v36 = vadd.f32 %v593_v26, %v592_v14  ;;  %v677_v12 = vrot.slane %v676_v6, 1  ;;  %v636_v13 = vadd.f32 %v635_v31, %v634_v23  ;;  %v182_v17 = vunpack.c.l.bf16 %v2076_v48 }
  0xb4   :  { %v719_v15 = vrot.slane %v718_v9, 1  ;;  %v811_v16 = vsel %vm769_vm0, %v468_v8, %v426_v7  ;;  %v194_v21 = vunpack.c.l.bf16 %v2078_v0  ;;  %v206_v22 = vunpack.c.l.bf16 %v2080_v1 }
  0xb5   :  { %v678_v18 = vadd.f32 %v677_v12, %v676_v6  ;;  %v812_v20 = vsel %vm771_vm1, %v510_v10, %v811_v16  ;;  %v218_v28 = vunpack.c.l.bf16 %v2082_v19  ;;  %v230_v29 = vunpack.c.l.bf16 %v2084_v2 }
  0xb6   :  { %v720_v24 = vadd.f32 %v719_v15, %v718_v9  ;;  %v813_v27 = vsel %vm773_vm2, %v552_v11, %v812_v20  ;;  %v242_v33 = vunpack.c.l.bf16 %v2087_v30  ;;  %v254_v48 = vunpack.c.l.bf16 %v2089_v5 }
  0xb7   :  { %v814_v32 = vsel %vm775_vm3, %v594_v36, %v813_v27  ;;  %v266_v34 = vunpack.c.l.bf16 %v2093_v52  ;;  %v414_v0 = vrot.slane %v182_v17, 4  ;;  %v456_v37 = vrot.slane %v194_v21, 4 }
  0xb8   :  { %v815_v35 = vsel %vm777_vm4, %v636_v13, %v814_v32  ;;  %v498_v1 = vrot.slane %v206_v22, 4  ;;  %v540_v58 = vrot.slane %v218_v28, 4  ;;  %v582_v38 = vrot.slane %v230_v29, 4  ;;  %v1426_v32 = vld [vmem:[#allocation11 + $0x70] sm:$0xff] }
  0xb9   :  { %v816_v57 = vsel %vm779_vm5, %v678_v18, %v815_v35  ;;  %v624_v19 = vrot.slane %v242_v33, 4  ;;  %v415_v39 = vadd.f32 %v414_v0, %v182_v17  ;;  %v457_v40 = vadd.f32 %v456_v37, %v194_v21  ;;  %v1422_v35 = vld [vmem:[#allocation11 + $0x50] sm:$0xff]  ;;  %v1421_v0 = vld [vmem:[#allocation11 + $0x48] sm:$0xff]  ;;  %v1420_v37 = vld [vmem:[#allocation11 + $0x40] sm:$0xff] }
  0xba   :  { %v817_v2 = vsel %vm781_vm6, %v720_v24, %v816_v57  ;;  %v499_v59 = vadd.f32 %v498_v1, %v206_v22  ;;  %v541_v30 = vadd.f32 %v540_v58, %v218_v28  ;;  %v583_v5 = vadd.f32 %v582_v38, %v230_v29  ;;  %v1427_v28 = vld [vmem:[#allocation11 + $0x78] sm:$0xff]  ;;  %v1418_v57 = vld [vmem:[#allocation11 + $0x30] sm:$0xff]  ;;  %v1417_v58 = vld [vmem:[#allocation11 + $0x28] sm:$0xff] }
  0xbb   :  { %1397 = vmatprep.mubr.f32.mxu0 %v817_v2  ;;  %v625_v41 = vadd.f32 %v624_v19, %v242_v33  ;;  %v666_v52 = vrot.slane %v254_v48, 4  ;;  %v416_v42 = vrot.slane %v415_v39, 2  ;;  %v458_v43 = vrot.slane %v457_v40, 2  ;;  %v1425_v33 = vld [vmem:[#allocation11 + $0x68] sm:$0xff]  ;;  %v1419_v1 = vld [vmem:[#allocation11 + $0x38] sm:$0xff]  ;;  %v1416_v38 = vld [vmem:[#allocation11 + $0x20] sm:$0xff] }
  0xbc   :  { %v500_v44 = vrot.slane %v499_v59, 2  ;;  %v708_v45 = vrot.slane %v266_v34, 4  ;;  %v542_v46 = vrot.slane %v541_v30, 2  ;;  %v584_v47 = vrot.slane %v583_v5, 2  ;;  %v1415_v19 = vld [vmem:[#allocation11 + $0x18] sm:$0xff]  ;;  %v1414_v2 = vld [vmem:[#allocation11 + $0x10] sm:$0xff] }
  0xbd   :  { %v626_v53 = vrot.slane %v625_v41, 2  ;;  %v667_v54 = vadd.f32 %v666_v52, %v254_v48  ;;  %v417_v60 = vadd.f32 %v416_v42, %v415_v39  ;;  %v459_v55 = vadd.f32 %v458_v43, %v457_v40  ;;  %v1424_v48 = vld [vmem:[#allocation11 + $0x60] sm:$0xff]  ;;  %v1413_v39 = vld [vmem:[#allocation11 + $0x8] sm:$0xff] }
  0xbe   :  { %v501_v49 = vadd.f32 %v500_v44, %v499_v59  ;;  %v709_v56 = vadd.f32 %v708_v45, %v266_v34  ;;  %v543_v61 = vadd.f32 %v542_v46, %v541_v30  ;;  %v585_v62 = vadd.f32 %v584_v47, %v583_v5  ;;  %v1423_v34 = vld [vmem:[#allocation11 + $0x58] sm:$0xff]  ;;  %v1412_v40 = vld [vmem:[#allocation11] sm:$0xff] }
  0xbf   :  { %v627_v14 = vadd.f32 %v626_v53, %v625_v41  ;;  %v668_v50 = vrot.slane %v667_v54, 2  ;;  %v418_v51 = vrot.slane %v417_v60, 1  ;;  %v460_v63 = vrot.slane %v459_v55, 1 }
  0xc0   :  { %v502_v23 = vrot.slane %v501_v49, 1  ;;  %v710_v3 = vrot.slane %v709_v56, 2  ;;  %v544_v25 = vrot.slane %v543_v61, 1  ;;  %v586_v4 = vrot.slane %v585_v62, 1 }
  0xc1   :  { %v628_v26 = vrot.slane %v627_v14, 1  ;;  %v669_v6 = vadd.f32 %v668_v50, %v667_v54  ;;  %v419_v7 = vadd.f32 %v418_v51, %v417_v60  ;;  %v461_v8 = vadd.f32 %v460_v63, %v459_v55  ;;  %v1528_v63 = vld [vmem:[%s2144_s6] ss:$0 sm:$0xff] }
  0xc2   :  { %v503_v31 = vadd.f32 %v502_v23, %v501_v49  ;;  %v711_v9 = vadd.f32 %v710_v3, %v709_v56  ;;  %v545_v10 = vadd.f32 %v544_v25, %v543_v61  ;;  %v587_v11 = vadd.f32 %v586_v4, %v585_v62  ;;  %v1527_v62 = vld [vmem:[%s2142_s4] ss:$0 sm:$0xff] }
  0xc3   :  { %v670_v36 = vrot.slane %v669_v6, 1  ;;  %v629_v12 = vadd.f32 %v628_v26, %v627_v14  ;;  %v804_v15 = vsel %vm769_vm0, %v461_v8, %v419_v7  ;;  %v1903_v29 = vmov 0.0  }
  0xc4   :  { %v712_v13 = vrot.slane %v711_v9, 1  ;;  %v805_v17 = vsel %vm771_vm1, %v503_v31, %v804_v15  ;;  %1721 = vmatprep.subr.mxu1 %v1903_v29  ;;  %1753 = vmatprep.mubr.msk.f32.mxu1 %vm1904_vm7, %v1903_v29 }
  0xc5   :  { %v671_v16 = vadd.f32 %v670_v36, %v669_v6  ;;  %v806_v20 = vsel %vm773_vm2, %v545_v10, %v805_v17  ;;  %1722 = vmatpush3.msra.mxu1 %v1427_v28 }
  0xc6   :  { %v713_v18 = vadd.f32 %v712_v13, %v711_v9  ;;  %v807_v21 = vsel %vm775_vm3, %v587_v11, %v806_v20  ;;  %1723 = vmatprep.subr.mxu1 %v1903_v29 }
  0xc7   :  { %v808_v22 = vsel %vm777_vm4, %v629_v12, %v807_v21  ;;  %1724 = vmatpush3.msra.mxu1 %v1426_v32 }
  0xc8   :  { %v809_v24 = vsel %vm779_vm5, %v671_v16, %v808_v22  ;;  %1725 = vmatprep.subr.mxu1 %v1903_v29 }
  0xc9   :  { %v810_v27 = vsel %vm781_vm6, %v713_v18, %v809_v24  ;;  %1726 = vmatpush3.msra.mxu1 %v1425_v33 }
  0xca   :  { %1398 = vmatmul.mubr.f32.vlgmr.msra.gmra.mxu0 %v810_v27  ;;  %1727 = vmatprep.subr.mxu1 %v1903_v29 }
  0xcb   :  { %1728 = vmatpush3.msra.mxu1 %v1424_v48 }
  0xcc   :  { %1729 = vmatprep.subr.mxu1 %v1903_v29 }
  0xcd   :  { %1730 = vmatpush3.msra.mxu1 %v1423_v34 }
  0xce   :  { %1731 = vmatprep.subr.mxu1 %v1903_v29 }
  0xcf   :  { %1732 = vmatpush3.msra.mxu1 %v1422_v35 }
  0xd0   :  { %1733 = vmatprep.subr.mxu1 %v1903_v29 }
  0xd1   :  { %1734 = vmatpush3.msra.mxu1 %v1421_v0 }
  0xd2   :  { %1735 = vmatprep.subr.mxu1 %v1903_v29 }
  0xd3   :  { %1736 = vmatpush3.msra.mxu1 %v1420_v37 }
  0xd4   :  { %1737 = vmatprep.subr.mxu1 %v1903_v29 }
  0xd5   :  { %1738 = vmatpush3.msra.mxu1 %v1419_v1 }
  0xd6   :  { %1739 = vmatprep.subr.mxu1 %v1903_v29 }
  0xd7   :  { %1740 = vmatpush3.msra.mxu1 %v1418_v57 }
  0xd8   :  { %1741 = vmatprep.subr.mxu1 %v1903_v29 }
  0xd9   :  { %1742 = vmatpush3.msra.mxu1 %v1417_v58 }
  0xda   :  { %1743 = vmatprep.subr.mxu1 %v1903_v29 }
  0xdb   :  { %1744 = vmatpush3.msra.mxu1 %v1416_v38 }
  0xdc   :  { %1745 = vmatprep.subr.mxu1 %v1903_v29 }
  0xdd   :  { %1746 = vmatpush3.msra.mxu1 %v1415_v19 }
  0xde   :  { %1747 = vmatprep.subr.mxu1 %v1903_v29 }
  0xdf   :  { %1748 = vmatpush3.msra.mxu1 %v1414_v2 }
  0xe0   :  { %1749 = vmatprep.subr.mxu1 %v1903_v29 }
  0xe1   :  { %1750 = vmatpush3.msra.mxu1 %v1413_v39 }
  0xe2   :  { %1751 = vmatprep.subr.mxu1 %v1903_v29 }
  0xe3   :  { %1752 = vmatpush3.msra.mxu1 %v1412_v40 }
 0x122   :  { %v1561_v59 = vpop.f32.mrf.mxu0 }
 0x123   :  { %v1596_v30 = vpop.f32.mrf.mxu1 }
 0x124   :  { %v1562_v5 = vpop.f32.mrf.mxu0 }
 0x125   :  { %v1597_v52 = vpop.f32.mrf.mxu1  ;;  %v1563_v44 = vadd.f32 %v1562_v5, %v1561_v59 }
 0x126   :  { %v1598_v45 = vadd.f32 %v1597_v52, %v1596_v30 }
 0x128   :  { %v1190_v53 = vadd.f32 %v1598_v45, %v1563_v44 }
 0x14b   :  { %v1631_v41 = vpop.f32.mrf.mxu0 }
 0x14d   :  { %v1632_v42 = vpop.f32.mrf.mxu0 }
 0x14e   :  { %v1633_v46 = vadd.f32 %v1632_v42, %v1631_v41 }
 0x150   :  { %v1260_v54 = vadd.f32 %v1633_v46, %v1190_v53 }
 0x16b   :  { %v1666_v43 = vpop.f32.mrf.mxu1 }
 0x16d   :  { %v1667_v47 = vpop.f32.mrf.mxu1 }
 0x16e   :  { %v1668_v60 = vadd.f32 %v1667_v47, %v1666_v43 }
 0x170   :  { %v1330_v56 = vadd.f32 %v1668_v60, %v1260_v54 }
 0x18a   :  { %v1701_v55 = vpop.f32.mrf.mxu0 }
 0x18c   :  { %v1702_v49 = vpop.f32.mrf.mxu0 }
 0x18d   :  { %v1703_v61 = vadd.f32 %v1702_v49, %v1701_v55 }
 0x18f   :  { %v1400_v14 = vadd.f32 %v1703_v61, %v1330_v56 }
 0x191   :  { %v1410_v50 = vadd.f32 %v1527_v62, %v1400_v14 }
 0x193   :  { %v1411_v51 = vmax.f32 %v1410_v50, 0.0 }
 0x195   :  { %1754 = vmatmul.mubr.f32.vlgmr.msra.gmra.mxu1 %v1411_v51 }
 0x255   :  { %v1501_v23 = vpop.f32.mrf.mxu1 }
 0x256   :  { %v1502_v3 = vadd.f32 %v1528_v63, %v1501_v23 }
 0x257   :  { %v1755_v25 = vpop.f32.mrf.mxu1 }
 0x258   :  { %1505 = vst [vmem:[#allocation12] sm:$0xff] %v1502_v3 }
 0x259   :  { %1510 = vsyncadd [#allocation5], 96  ;;  %s1905_s13 = smov [#allocation12]  }
 0x25a   :  { %s1511_s14 = sshll.u32 %s1905_s13, 4  ;;  %s1512_s14 = int_to_ptr.vmem [resolvable:$true] %s1511_s14 }
 0x25b   :  { %s1861_s15 = scalar_lea.vmem %s1512_s14, 32  ;;  %s1865_s16 = scalar_lea.vmem %s1512_s14, 128 }
 0x25c   :  { %p1862_p6 = scmp.ne.s32.totalorder %s1512_s14, %s1861_s15  ;;  %p1866_p7 = scmp.lt.s32.totalorder %s1512_s14, %s1512_s14 }
 0x25d   :  { %p1867_p8 = scmp.lt.s32.totalorder %s1865_s16, %s1861_s15 }
 0x25f   :  { %p1868_p9 = por %p1867_p8, %p1866_p7 }
 0x261   :  { %p1869_p10 = pnand %p1868_p9, %p1862_p6 }
 0x263   :  { %1872 = shalt.err (!%p1869_p10)
}
 0x264   :  { %s1906_s4 = smov 32   ;;  %s1907_s17 = smov 2  }
 0x265   :  { %1517 = dma.vmem_to_hbm [thread:$0]  %s1512_s14, 32, %s2145_s7, [#allocation5], %s1906_s4, %s1906_s4, %s1907_s17  }
 0x266   :  { %1887 = dma.done.wait [#allocation5], 128  }
 0x267   :  { %1888 = vsyncadd [#allocation5], 4294967168 }
 0x268   :  { %1521 = vsyncpa [#allocation4], 1 }
 0x269   :  { %1522 = vsyncpa [#allocation7], 1 }
 0x26a   :  { %1523 = vsyncpa [#allocation10], 1 }
 0x26b   :  { %1524 = vsyncpa [#allocation5], 1 }

</bundles_post_ra>
